<compile_context>
chip_gen: v6e
topology: v6e:2x2x1
jax: 0.10.0
libtpu: 0.0.40
codegen_flags: <defaults>
</compile_context>

<pallas_src>
import functools

import jax
import jax.numpy as jnp
from jax.experimental import pallas as pl
from jax.experimental.pallas import tpu as pltpu

BITWIDTH = 16
BN_EPS = 1e-5


def _round_up(v, m):
    return (v + m - 1) // m * m


def _fix_params(maxabs):
    """nics_fix_pt auto-scale fixed point (method=1): step, 1/step, clip lo/hi."""
    scale = jnp.ceil(jnp.log2(jnp.maximum(maxabs, 1e-30)))
    step = jnp.exp2(scale - (BITWIDTH - 1))
    inv_step = jnp.exp2((BITWIDTH - 1) - scale)   # exact: step is a power of 2
    lo = -jnp.exp2(scale)
    hi = jnp.exp2(scale) - step
    return step, inv_step, lo, hi


def _quantize(v, maxabs):
    step, inv_step, lo, hi = _fix_params(maxabs)
    return jnp.clip(jnp.round(v * inv_step) * step, lo, hi)


# ---------------------------------------------------------------------------
# Pass 1: fix0 -> relu -> fix1 -> conv (in-kernel im2col via per-tap matmuls)
#         plus per-batch per-channel max/min of the raw conv output.
# ---------------------------------------------------------------------------
def _fused_conv_stats_kernel(qin_ref, w_ref, mask_ref, x_ref, y_ref, st_ref, *,
                             taps, l_acc):
    # fix0 -> relu -> fix1 on the flat padded input block (scalars from SMEM).
    x = x_ref[0]                                              # (c_in_p, x_len)
    x0 = jnp.clip(jnp.round(x * qin_ref[0]) * qin_ref[1], qin_ref[2], qin_ref[3])
    xr = jnp.maximum(x0, 0.0)
    x1 = jnp.clip(jnp.round(xr * qin_ref[4]) * qin_ref[5], qin_ref[6], qin_ref[7])

    # conv: KH*KW MXU matmuls over statically shifted slices of the flat plane
    # (no materialized im2col patches).
    c_pad = w_ref.shape[1]
    acc = jnp.zeros((c_pad, l_acc), jnp.float32)
    for t, d in enumerate(taps):                              # static unroll
        acc = acc + jnp.dot(w_ref[t], x1[:, d:d + l_acc],
                            preferred_element_type=jnp.float32)
    y_ref[0] = acc

    # per-channel max/min over valid columns only (junk columns of the padded
    # flat domain are masked; needed to derive the fix2 / fix3 scales exactly).
    valid = mask_ref[...] > 0.5                               # (1, l_acc)
    big = jnp.float32(jnp.finfo(jnp.float32).max)
    st_ref[0, :, 0:1] = jnp.max(jnp.where(valid, acc, -big), axis=1, keepdims=True)
    st_ref[0, :, 1:2] = jnp.min(jnp.where(valid, acc, big), axis=1, keepdims=True)


# ---------------------------------------------------------------------------
# Pass 2: per-channel sum / sum-of-squares of fix2(y) (BN batch statistics).
# ---------------------------------------------------------------------------
def _fix2_bn_stats_kernel(q_ref, mask_ref, y_ref, ss_ref):
    y = y_ref[0]
    q2 = jnp.clip(jnp.round(y * q_ref[0]) * q_ref[1], q_ref[2], q_ref[3])
    q2 = q2 * mask_ref[...]                                   # zero junk columns
    ss_ref[0, :, 0:1] = jnp.sum(q2, axis=1, keepdims=True)
    ss_ref[0, :, 1:2] = jnp.sum(q2 * q2, axis=1, keepdims=True)


# ---------------------------------------------------------------------------
# Pass 3: fix2 -> per-channel BN affine -> fix3, written N-major.
# ---------------------------------------------------------------------------
def _fix2_bn_fix3_kernel(q_ref, a_ref, b_ref, y_ref, o_ref):
    y = y_ref[0]
    q2 = jnp.clip(jnp.round(y * q_ref[0]) * q_ref[1], q_ref[2], q_ref[3])
    bn = a_ref[...] * q2 + b_ref[...]
    o_ref[0] = jnp.clip(jnp.round(bn * q_ref[4]) * q_ref[5], q_ref[6], q_ref[7])


@functools.partial(jax.jit, static_argnames=("kernel_size", "stride", "padding"))
def relu_conv_bn(x, weight, gamma, beta, *, kernel_size, stride, padding):
    """x: (N, C_in, H, W) f32, weight: (C_out, C_in, KH, KW) f32, gamma/beta: (C_out,)."""
    f32 = jnp.float32
    x = x.astype(f32)
    weight = weight.astype(f32)
    n, c_in, h, w = x.shape
    c_out = weight.shape[0]
    kh = kw = kernel_size
    s = stride
    hp, wp = h + 2 * padding, w + 2 * padding
    oh = (hp - kh) // s + 1
    ow = (wp - kw) // s + 1

    # ---- fix0 / fix1 scales from a single min/max pass over x.
    x_min = jnp.min(x)
    x_max = jnp.max(x)
    m0 = jnp.maximum(jnp.abs(x_min), jnp.abs(x_max))
    step0, inv0, lo0, hi0 = _fix_params(m0)
    m1 = jnp.maximum(jnp.clip(jnp.round(x_max * inv0) * step0, lo0, hi0), 0.0)
    step1, inv1, lo1, hi1 = _fix_params(m1)
    qin_params = jnp.stack([inv0, step0, lo0, hi0, inv1, step1, lo1, hi1])

    # ---- Conv2d_fix weight: one tensor-wide scale, tap-major (KH*KW, C, C_in)
    #      layout so the kernel indexes taps on a leading (cheap) dim.
    c_pad = _round_up(c_out, 8)
    c_in_p = _round_up(c_in, 8)
    wq = _quantize(weight, jnp.max(jnp.abs(weight)))
    wq = jnp.transpose(wq, (2, 3, 0, 1)).reshape(kh * kw, c_out, c_in)
    wq = jnp.pad(wq, ((0, 0), (0, c_pad - c_out), (0, c_in_p - c_in)))

    # ---- flat padded input domain: output (oh, ow) lives at flat column
    #      q = s*(oh*wp + ow); tap (i, j) reads flat column q + i*wp + j.
    l_acc = _round_up(s * oh * wp, 128)          # accumulator / y row length
    d_max = (kh - 1) * wp + (kw - 1)
    x_len = _round_up(l_acc + d_max, 128)
    xp = jnp.pad(x, ((0, 0), (0, 0), (padding, padding), (padding, padding)))
    xf = xp.reshape(n, c_in, hp * wp)
    xf = jnp.pad(xf, ((0, 0), (0, c_in_p - c_in), (0, x_len - hp * wp)))

    # valid-column mask of the flat domain (built once, resident in VMEM).
    col = jnp.arange(l_acc)
    p_idx = col // s
    valid = (col % s == 0) & (p_idx % wp < ow) & (p_idx // wp < oh)
    mask = valid.astype(f32).reshape(1, l_acc)

    taps = tuple(i * wp + j for i in range(kh) for j in range(kw))
    k_eff = kh * kw * c_in_p

    cparams = pltpu.CompilerParams(
        dimension_semantics=("parallel",),       # batch planes shard across TCs
        vmem_limit_bytes=48 * 1024 * 1024)       # stays under v7x's 64 MiB VMEM
    smem_spec = pl.BlockSpec(memory_space=pltpu.MemorySpace.SMEM)

    # ---- pass 1: fused quantized ReLU + conv + per-channel y extremes.
    y, st = pl.pallas_call(
        functools.partial(_fused_conv_stats_kernel, taps=taps, l_acc=l_acc),
        grid=(n,),
        in_specs=[
            smem_spec,                                                  # fix0/1
            pl.BlockSpec((kh * kw, c_pad, c_in_p), lambda b: (0, 0, 0)),  # W
            pl.BlockSpec((1, l_acc), lambda b: (0, 0)),                 # mask
            pl.BlockSpec((1, c_in_p, x_len), lambda b: (b, 0, 0)),      # x plane
        ],
        out_specs=(
            pl.BlockSpec((1, c_pad, l_acc), lambda b: (b, 0, 0)),       # y
            pl.BlockSpec((1, c_pad, 2), lambda b: (b, 0, 0)),           # max/min
        ),
        out_shape=(
            jax.ShapeDtypeStruct((n, c_pad, l_acc), f32),
            jax.ShapeDtypeStruct((n, c_pad, 2), f32),
        ),
        compiler_params=cparams,
        cost_estimate=pl.CostEstimate(
            flops=2 * n * c_pad * l_acc * k_eff,
            transcendentals=0,
            bytes_accessed=4 * n * (c_in_p * x_len + c_pad * l_acc)),
    )(qin_params, wq, mask, xf)

    # ---- fix2 scale from the global extremes of y (exact).
    ymax_c = jnp.max(st[:, :c_out, 0], axis=0)
    ymin_c = jnp.min(st[:, :c_out, 1], axis=0)
    m2 = jnp.max(jnp.maximum(jnp.abs(ymax_c), jnp.abs(ymin_c)))
    step2, inv2, lo2, hi2 = _fix_params(m2)
    fix2_params = jnp.stack([inv2, step2, lo2, hi2])

    # ---- pass 2: BN batch statistics over fix2(y).
    ss = pl.pallas_call(
        _fix2_bn_stats_kernel,
        grid=(n,),
        in_specs=[
            smem_spec,
            pl.BlockSpec((1, l_acc), lambda b: (0, 0)),
            pl.BlockSpec((1, c_pad, l_acc), lambda b: (b, 0, 0)),
        ],
        out_specs=pl.BlockSpec((1, c_pad, 2), lambda b: (b, 0, 0)),
        out_shape=jax.ShapeDtypeStruct((n, c_pad, 2), f32),
        compiler_params=cparams,
        cost_estimate=pl.CostEstimate(
            flops=6 * n * c_pad * l_acc, transcendentals=0,
            bytes_accessed=4 * n * c_pad * l_acc),
    )(fix2_params, mask, y)

    m_count = n * oh * ow
    sum_c = jnp.sum(ss[:, :c_out, 0], axis=0)
    sumsq_c = jnp.sum(ss[:, :c_out, 1], axis=0)
    mean_c = sum_c / m_count
    var_c = jnp.maximum(sumsq_c / m_count - mean_c * mean_c, 0.0)   # biased var
    a_c = gamma.astype(f32) / jnp.sqrt(var_c + BN_EPS)
    b_c = beta.astype(f32) - mean_c * a_c

    # fix3 scale: BN is per-channel affine and fix2 is monotone, so max|bn| is
    # reached at the quantized per-channel extremes of y.
    q2max_c = jnp.clip(jnp.round(ymax_c * inv2) * step2, lo2, hi2)
    q2min_c = jnp.clip(jnp.round(ymin_c * inv2) * step2, lo2, hi2)
    m3 = jnp.max(jnp.maximum(jnp.abs(a_c * q2max_c + b_c),
                             jnp.abs(a_c * q2min_c + b_c)))
    step3, inv3, lo3, hi3 = _fix_params(m3)
    fix23_params = jnp.stack([inv2, step2, lo2, hi2, inv3, step3, lo3, hi3])

    a_full = jnp.zeros((c_pad, 1), f32).at[:c_out, 0].set(a_c)
    b_full = jnp.zeros((c_pad, 1), f32).at[:c_out, 0].set(b_c)

    # ---- pass 3: fix2 -> BN affine -> fix3, N-major output (no transpose).
    out_flat = pl.pallas_call(
        _fix2_bn_fix3_kernel,
        grid=(n,),
        in_specs=[
            smem_spec,
            pl.BlockSpec((c_pad, 1), lambda b: (0, 0)),
            pl.BlockSpec((c_pad, 1), lambda b: (0, 0)),
            pl.BlockSpec((1, c_pad, l_acc), lambda b: (b, 0, 0)),
        ],
        out_specs=pl.BlockSpec((1, c_pad, l_acc), lambda b: (b, 0, 0)),
        out_shape=jax.ShapeDtypeStruct((n, c_pad, l_acc), f32),
        compiler_params=cparams,
        cost_estimate=pl.CostEstimate(
            flops=8 * n * c_pad * l_acc, transcendentals=0,
            bytes_accessed=4 * n * 2 * c_pad * l_acc),
    )(fix23_params, a_full, b_full, y)

    # strip padded channels and the interleaved junk columns of the flat domain.
    out = out_flat[:, :c_out, :s * oh * wp].reshape(n, c_out, oh, s * wp)
    out = out[:, :, :, ::s][:, :, :, :ow]
    return out


def _reference(x, weight, gamma, beta, *, kernel_size, stride, padding):
    """Pure-JAX reference mirroring the PyTorch module's forward."""
    def q(v):
        maxabs = jnp.max(jnp.abs(v))
        scale = jnp.ceil(jnp.log2(jnp.maximum(maxabs, 1e-30)))
        step = jnp.exp2(scale - (BITWIDTH - 1))
        return jnp.clip(jnp.round(v / step) * step,
                        -jnp.exp2(scale), jnp.exp2(scale) - step)
    x = q(x)
    x = q(jnp.maximum(x, 0.0))
    y = jax.lax.conv_general_dilated(
        x, q(weight), window_strides=(stride, stride),
        padding=[(padding, padding), (padding, padding)],
        dimension_numbers=("NCHW", "OIHW", "NCHW"),
        precision=jax.lax.Precision.HIGHEST)
    y = q(y)
    mean = jnp.mean(y, axis=(0, 2, 3), keepdims=True)
    var = jnp.mean((y - mean) ** 2, axis=(0, 2, 3), keepdims=True)
    yb = (y - mean) / jnp.sqrt(var + BN_EPS)
    yb = yb * gamma.reshape(1, -1, 1, 1) + beta.reshape(1, -1, 1, 1)
    return q(yb)


if __name__ == "__main__":
    # Small, deterministic example consistent with the module:
    # C_in=4, C_out=8, kernel_size=3, stride=1, padding=1, affine=True.
    N, C_IN, H, W = 2, 4, 16, 16
    C_OUT, KSIZE, STRIDE, PAD = 8, 3, 1, 1

    key = jax.random.PRNGKey(0)
    kx, kw_key = jax.random.split(key)
    x = jax.random.normal(kx, (N, C_IN, H, W), dtype=jnp.float32)
    fan_in = C_IN * KSIZE * KSIZE
    bound = 1.0 / (fan_in ** 0.5)
    weight = jax.random.uniform(kw_key, (C_OUT, C_IN, KSIZE, KSIZE),
                                dtype=jnp.float32, minval=-bound, maxval=bound)
    gamma = jnp.ones((C_OUT,), jnp.float32)   # BN affine init
    beta = jnp.zeros((C_OUT,), jnp.float32)

    out = relu_conv_bn(x, weight, gamma, beta,
                       kernel_size=KSIZE, stride=STRIDE, padding=PAD)
    out = jax.block_until_ready(out)

    assert out.shape == (N, C_OUT, H, W), out.shape
    assert bool(jnp.all(jnp.isfinite(out)))

    ref = _reference(x, weight, gamma, beta,
                     kernel_size=KSIZE, stride=STRIDE, padding=PAD)
    max_err = float(jnp.max(jnp.abs(out - ref)))
    assert max_err < 1e-2, max_err
    print("KERNEL_OK")
</pallas_src>

<mosaic_0001>
module attributes {stable_mosaic.version = 11 : i64} {
  func.func @_fused_conv_stats_kernel(%arg0: i32, %arg1: memref<8xf32, #tpu.memory_space<smem>>, %arg2: memref<9x8x8xf32, #tpu.memory_space<vmem>>, %arg3: memref<1x384xf32, #tpu.memory_space<vmem>>, %arg4: memref<1x8x512xf32, #tpu.memory_space<vmem>>, %arg5: memref<1x8x384xf32, #tpu.memory_space<vmem>>, %arg6: memref<1x8x2xf32, #tpu.memory_space<vmem>>) attributes {dimension_semantics = [#tpu.dimension_semantics<parallel>], iteration_bounds = array<i64: 2>, scalar_prefetch = 0 : i64, scratch_operands = 0 : i64, tpu.core_type = #tpu.core_type<tc>, window_params = [{transform_indices = @transform_0, window_bounds = array<i64: 8>}, {pipeline_mode = #tpu.pipeline_mode<synchronous>, transform_indices = @transform_1, window_bounds = array<i64: 9, 8, 8>}, {pipeline_mode = #tpu.pipeline_mode<synchronous>, transform_indices = @transform_2, window_bounds = array<i64: 1, 384>}, {transform_indices = @transform_3, window_bounds = array<i64: 1, 8, 512>}, {transform_indices = @transform_4, window_bounds = array<i64: 1, 8, 384>}, {transform_indices = @transform_5, window_bounds = array<i64: 1, 8, 2>}]} {
    %c0 = arith.constant 0 : index
    %c0_0 = arith.constant 0 : index
    %c0_1 = arith.constant 0 : index
    %0 = vector.load %arg4[%c0, %c0_0, %c0_1] : memref<1x8x512xf32, #tpu.memory_space<vmem>>, vector<1x8x512xf32>
    %1 = vector.shape_cast %0 : vector<1x8x512xf32> to vector<8x512xf32>
    %c0_2 = arith.constant 0 : index
    %2 = memref.load %arg1[%c0_2] : memref<8xf32, #tpu.memory_space<smem>>
    %3 = vector.broadcast %2 : f32 to vector<8x512xf32>
    %4 = arith.mulf %1, %3 : vector<8x512xf32>
    %5 = math.roundeven %4 : vector<8x512xf32>
    %c1 = arith.constant 1 : index
    %6 = memref.load %arg1[%c1] : memref<8xf32, #tpu.memory_space<smem>>
    %7 = vector.broadcast %6 : f32 to vector<8x512xf32>
    %8 = arith.mulf %5, %7 : vector<8x512xf32>
    %c2 = arith.constant 2 : index
    %9 = memref.load %arg1[%c2] : memref<8xf32, #tpu.memory_space<smem>>
    %c3 = arith.constant 3 : index
    %10 = memref.load %arg1[%c3] : memref<8xf32, #tpu.memory_space<smem>>
    %11 = vector.broadcast %9 : f32 to vector<8x512xf32>
    %12 = arith.maximumf %11, %8 : vector<8x512xf32>
    %13 = vector.broadcast %10 : f32 to vector<8x512xf32>
    %14 = arith.minimumf %13, %12 : vector<8x512xf32>
    %cst = arith.constant 0.000000e+00 : f32
    %15 = vector.broadcast %cst : f32 to vector<8x512xf32>
    %16 = arith.maximumf %14, %15 : vector<8x512xf32>
    %c4 = arith.constant 4 : index
    %17 = memref.load %arg1[%c4] : memref<8xf32, #tpu.memory_space<smem>>
    %18 = vector.broadcast %17 : f32 to vector<8x512xf32>
    %19 = arith.mulf %16, %18 : vector<8x512xf32>
    %20 = math.roundeven %19 : vector<8x512xf32>
    %c5 = arith.constant 5 : index
    %21 = memref.load %arg1[%c5] : memref<8xf32, #tpu.memory_space<smem>>
    %22 = vector.broadcast %21 : f32 to vector<8x512xf32>
    %23 = arith.mulf %20, %22 : vector<8x512xf32>
    %c6 = arith.constant 6 : index
    %24 = memref.load %arg1[%c6] : memref<8xf32, #tpu.memory_space<smem>>
    %c7 = arith.constant 7 : index
    %25 = memref.load %arg1[%c7] : memref<8xf32, #tpu.memory_space<smem>>
    %26 = vector.broadcast %24 : f32 to vector<8x512xf32>
    %27 = arith.maximumf %26, %23 : vector<8x512xf32>
    %28 = vector.broadcast %25 : f32 to vector<8x512xf32>
    %29 = arith.minimumf %28, %27 : vector<8x512xf32>
    %cst_3 = arith.constant 0.000000e+00 : f32
    %30 = vector.broadcast %cst_3 : f32 to vector<8x384xf32>
    %c0_4 = arith.constant 0 : index
    %c0_5 = arith.constant 0 : index
    %c0_6 = arith.constant 0 : index
    %31 = vector.load %arg2[%c0_4, %c0_5, %c0_6] : memref<9x8x8xf32, #tpu.memory_space<vmem>>, vector<1x8x8xf32>
    %32 = vector.shape_cast %31 : vector<1x8x8xf32> to vector<8x8xf32>
    %33 = vector.extract_strided_slice %29 {offsets = [0, 0], sizes = [8, 384], strides = [1, 1]} : vector<8x512xf32> to vector<8x384xf32>
    %cst_7 = arith.constant dense<0.000000e+00> : vector<8x384xf32>
    %34 = tpu.matmul %32, %33, %cst_7 {dimension_numbers = #tpu.dot_dimension_numbers<[1], [0], [0], [1], [0, 0, 1, 1], [], []>} : vector<8x8xf32>, vector<8x384xf32>, vector<8x384xf32> -> vector<8x384xf32>
    %35 = arith.addf %30, %34 : vector<8x384xf32>
    %c1_8 = arith.constant 1 : index
    %c0_9 = arith.constant 0 : index
    %c0_10 = arith.constant 0 : index
    %36 = vector.load %arg2[%c1_8, %c0_9, %c0_10] : memref<9x8x8xf32, #tpu.memory_space<vmem>>, vector<1x8x8xf32>
    %37 = vector.shape_cast %36 : vector<1x8x8xf32> to vector<8x8xf32>
    %38 = vector.extract_strided_slice %29 {offsets = [0, 1], sizes = [8, 384], strides = [1, 1]} : vector<8x512xf32> to vector<8x384xf32>
    %cst_11 = arith.constant dense<0.000000e+00> : vector<8x384xf32>
    %39 = tpu.matmul %37, %38, %cst_11 {dimension_numbers = #tpu.dot_dimension_numbers<[1], [0], [0], [1], [0, 0, 1, 1], [], []>} : vector<8x8xf32>, vector<8x384xf32>, vector<8x384xf32> -> vector<8x384xf32>
    %40 = arith.addf %35, %39 : vector<8x384xf32>
    %c2_12 = arith.constant 2 : index
    %c0_13 = arith.constant 0 : index
    %c0_14 = arith.constant 0 : index
    %41 = vector.load %arg2[%c2_12, %c0_13, %c0_14] : memref<9x8x8xf32, #tpu.memory_space<vmem>>, vector<1x8x8xf32>
    %42 = vector.shape_cast %41 : vector<1x8x8xf32> to vector<8x8xf32>
    %43 = vector.extract_strided_slice %29 {offsets = [0, 2], sizes = [8, 384], strides = [1, 1]} : vector<8x512xf32> to vector<8x384xf32>
    %cst_15 = arith.constant dense<0.000000e+00> : vector<8x384xf32>
    %44 = tpu.matmul %42, %43, %cst_15 {dimension_numbers = #tpu.dot_dimension_numbers<[1], [0], [0], [1], [0, 0, 1, 1], [], []>} : vector<8x8xf32>, vector<8x384xf32>, vector<8x384xf32> -> vector<8x384xf32>
    %45 = arith.addf %40, %44 : vector<8x384xf32>
    %c3_16 = arith.constant 3 : index
    %c0_17 = arith.constant 0 : index
    %c0_18 = arith.constant 0 : index
    %46 = vector.load %arg2[%c3_16, %c0_17, %c0_18] : memref<9x8x8xf32, #tpu.memory_space<vmem>>, vector<1x8x8xf32>
    %47 = vector.shape_cast %46 : vector<1x8x8xf32> to vector<8x8xf32>
    %48 = vector.extract_strided_slice %29 {offsets = [0, 18], sizes = [8, 384], strides = [1, 1]} : vector<8x512xf32> to vector<8x384xf32>
    %cst_19 = arith.constant dense<0.000000e+00> : vector<8x384xf32>
    %49 = tpu.matmul %47, %48, %cst_19 {dimension_numbers = #tpu.dot_dimension_numbers<[1], [0], [0], [1], [0, 0, 1, 1], [], []>} : vector<8x8xf32>, vector<8x384xf32>, vector<8x384xf32> -> vector<8x384xf32>
    %50 = arith.addf %45, %49 : vector<8x384xf32>
    %c4_20 = arith.constant 4 : index
    %c0_21 = arith.constant 0 : index
    %c0_22 = arith.constant 0 : index
    %51 = vector.load %arg2[%c4_20, %c0_21, %c0_22] : memref<9x8x8xf32, #tpu.memory_space<vmem>>, vector<1x8x8xf32>
    %52 = vector.shape_cast %51 : vector<1x8x8xf32> to vector<8x8xf32>
    %53 = vector.extract_strided_slice %29 {offsets = [0, 19], sizes = [8, 384], strides = [1, 1]} : vector<8x512xf32> to vector<8x384xf32>
    %cst_23 = arith.constant dense<0.000000e+00> : vector<8x384xf32>
    %54 = tpu.matmul %52, %53, %cst_23 {dimension_numbers = #tpu.dot_dimension_numbers<[1], [0], [0], [1], [0, 0, 1, 1], [], []>} : vector<8x8xf32>, vector<8x384xf32>, vector<8x384xf32> -> vector<8x384xf32>
    %55 = arith.addf %50, %54 : vector<8x384xf32>
    %c5_24 = arith.constant 5 : index
    %c0_25 = arith.constant 0 : index
    %c0_26 = arith.constant 0 : index
    %56 = vector.load %arg2[%c5_24, %c0_25, %c0_26] : memref<9x8x8xf32, #tpu.memory_space<vmem>>, vector<1x8x8xf32>
    %57 = vector.shape_cast %56 : vector<1x8x8xf32> to vector<8x8xf32>
    %58 = vector.extract_strided_slice %29 {offsets = [0, 20], sizes = [8, 384], strides = [1, 1]} : vector<8x512xf32> to vector<8x384xf32>
    %cst_27 = arith.constant dense<0.000000e+00> : vector<8x384xf32>
    %59 = tpu.matmul %57, %58, %cst_27 {dimension_numbers = #tpu.dot_dimension_numbers<[1], [0], [0], [1], [0, 0, 1, 1], [], []>} : vector<8x8xf32>, vector<8x384xf32>, vector<8x384xf32> -> vector<8x384xf32>
    %60 = arith.addf %55, %59 : vector<8x384xf32>
    %c6_28 = arith.constant 6 : index
    %c0_29 = arith.constant 0 : index
    %c0_30 = arith.constant 0 : index
    %61 = vector.load %arg2[%c6_28, %c0_29, %c0_30] : memref<9x8x8xf32, #tpu.memory_space<vmem>>, vector<1x8x8xf32>
    %62 = vector.shape_cast %61 : vector<1x8x8xf32> to vector<8x8xf32>
    %63 = vector.extract_strided_slice %29 {offsets = [0, 36], sizes = [8, 384], strides = [1, 1]} : vector<8x512xf32> to vector<8x384xf32>
    %cst_31 = arith.constant dense<0.000000e+00> : vector<8x384xf32>
    %64 = tpu.matmul %62, %63, %cst_31 {dimension_numbers = #tpu.dot_dimension_numbers<[1], [0], [0], [1], [0, 0, 1, 1], [], []>} : vector<8x8xf32>, vector<8x384xf32>, vector<8x384xf32> -> vector<8x384xf32>
    %65 = arith.addf %60, %64 : vector<8x384xf32>
    %c7_32 = arith.constant 7 : index
    %c0_33 = arith.constant 0 : index
    %c0_34 = arith.constant 0 : index
    %66 = vector.load %arg2[%c7_32, %c0_33, %c0_34] : memref<9x8x8xf32, #tpu.memory_space<vmem>>, vector<1x8x8xf32>
    %67 = vector.shape_cast %66 : vector<1x8x8xf32> to vector<8x8xf32>
    %68 = vector.extract_strided_slice %29 {offsets = [0, 37], sizes = [8, 384], strides = [1, 1]} : vector<8x512xf32> to vector<8x384xf32>
    %cst_35 = arith.constant dense<0.000000e+00> : vector<8x384xf32>
    %69 = tpu.matmul %67, %68, %cst_35 {dimension_numbers = #tpu.dot_dimension_numbers<[1], [0], [0], [1], [0, 0, 1, 1], [], []>} : vector<8x8xf32>, vector<8x384xf32>, vector<8x384xf32> -> vector<8x384xf32>
    %70 = arith.addf %65, %69 : vector<8x384xf32>
    %c8 = arith.constant 8 : index
    %c0_36 = arith.constant 0 : index
    %c0_37 = arith.constant 0 : index
    %71 = vector.load %arg2[%c8, %c0_36, %c0_37] : memref<9x8x8xf32, #tpu.memory_space<vmem>>, vector<1x8x8xf32>
    %72 = vector.shape_cast %71 : vector<1x8x8xf32> to vector<8x8xf32>
    %73 = vector.extract_strided_slice %29 {offsets = [0, 38], sizes = [8, 384], strides = [1, 1]} : vector<8x512xf32> to vector<8x384xf32>
    %cst_38 = arith.constant dense<0.000000e+00> : vector<8x384xf32>
    %74 = tpu.matmul %72, %73, %cst_38 {dimension_numbers = #tpu.dot_dimension_numbers<[1], [0], [0], [1], [0, 0, 1, 1], [], []>} : vector<8x8xf32>, vector<8x384xf32>, vector<8x384xf32> -> vector<8x384xf32>
    %75 = arith.addf %70, %74 : vector<8x384xf32>
    %c0_39 = arith.constant 0 : index
    %c0_40 = arith.constant 0 : index
    %c0_41 = arith.constant 0 : index
    %76 = vector.load %arg5[%c0_39, %c0_40, %c0_41] : memref<1x8x384xf32, #tpu.memory_space<vmem>>, vector<1x8x384xf32>
    %77 = vector.shape_cast %76 : vector<1x8x384xf32> to vector<8x384xf32>
    %78 = vector.shape_cast %75 : vector<8x384xf32> to vector<1x8x384xf32>
    tpu.vector_store %arg5[%c0_39, %c0_40, %c0_41], %78 {strides = array<i32>} : memref<1x8x384xf32, #tpu.memory_space<vmem>>, vector<1x8x384xf32>,
    %c0_42 = arith.constant 0 : index
    %c0_43 = arith.constant 0 : index
    %79 = vector.load %arg3[%c0_42, %c0_43] : memref<1x384xf32, #tpu.memory_space<vmem>>, vector<1x384xf32>
    %cst_44 = arith.constant 5.000000e-01 : f32
    %80 = vector.broadcast %cst_44 : f32 to vector<1x384xf32>
    %81 = arith.cmpf ogt, %79, %80 : vector<1x384xf32>
    %cst_45 = arith.constant 0.000000e+00 : f32
    %cst_46 = arith.constant 3.40282347E+38 : f32
    %82 = arith.subf %cst_45, %cst_46 : f32
    %83 = vector.shape_cast %81 : vector<1x384xi1> to vector<1x384xi1>
    %84 = vector.broadcast %83 : vector<1x384xi1> to vector<8x384xi1>
    %85 = vector.broadcast %82 : f32 to vector<8x384xf32>
    %86 = arith.select %84, %75, %85 : vector<8x384xi1>, vector<8x384xf32>
    %cst_47 = arith.constant dense<0xFF800000> : vector<8xf32>
    %87 = vector.multi_reduction <maximumf>, %86, %cst_47 [1] : vector<8x384xf32> to vector<8xf32>
    %88 = vector.shape_cast %87 : vector<8xf32> to vector<8x1xf32>
    %c0_48 = arith.constant 0 : index
    %c0_49 = arith.constant 0 : index
    %c0_50 = arith.constant 0 : index
    %89 = vector.load %arg6[%c0_48, %c0_49, %c0_50] : memref<1x8x2xf32, #tpu.memory_space<vmem>>, vector<1x8x1xf32>
    %90 = vector.shape_cast %89 : vector<1x8x1xf32> to vector<8x1xf32>
    %91 = vector.shape_cast %88 : vector<8x1xf32> to vector<1x8x1xf32>
    tpu.vector_store %arg6[%c0_48, %c0_49, %c0_50], %91 {strides = array<i32>} : memref<1x8x2xf32, #tpu.memory_space<vmem>>, vector<1x8x1xf32>,
    %cst_51 = arith.constant 3.40282347E+38 : f32
    %92 = vector.shape_cast %81 : vector<1x384xi1> to vector<1x384xi1>
    %93 = vector.broadcast %92 : vector<1x384xi1> to vector<8x384xi1>
    %94 = vector.broadcast %cst_51 : f32 to vector<8x384xf32>
    %95 = arith.select %93, %75, %94 : vector<8x384xi1>, vector<8x384xf32>
    %cst_52 = arith.constant dense<0x7F800000> : vector<8xf32>
    %96 = vector.multi_reduction <minimumf>, %95, %cst_52 [1] : vector<8x384xf32> to vector<8xf32>
    %97 = vector.shape_cast %96 : vector<8xf32> to vector<8x1xf32>
    %c0_53 = arith.constant 0 : index
    %c0_54 = arith.constant 0 : index
    %c1_55 = arith.constant 1 : index
    %98 = vector.load %arg6[%c0_53, %c0_54, %c1_55] : memref<1x8x2xf32, #tpu.memory_space<vmem>>, vector<1x8x1xf32>
    %99 = vector.shape_cast %98 : vector<1x8x1xf32> to vector<8x1xf32>
    %100 = vector.shape_cast %97 : vector<8x1xf32> to vector<1x8x1xf32>
    tpu.vector_store %arg6[%c0_53, %c0_54, %c1_55], %100 {strides = array<i32>} : memref<1x8x2xf32, #tpu.memory_space<vmem>>, vector<1x8x1xf32>,
    return
  }
  func.func @transform_0(%arg0: i32) -> i32 {
    %c0_i32 = arith.constant 0 : i32
    %c0_i32_0 = arith.constant 0 : i32
    return %c0_i32 : i32
  }
  func.func @transform_1(%arg0: i32) -> (i32, i32, i32) {
    %c0_i32 = arith.constant 0 : i32
    %c0_i32_0 = arith.constant 0 : i32
    %c0_i32_1 = arith.constant 0 : i32
    %c0_i32_2 = arith.constant 0 : i32
    return %c0_i32, %c0_i32_0, %c0_i32_1 : i32, i32, i32
  }
  func.func @transform_2(%arg0: i32) -> (i32, i32) {
    %c0_i32 = arith.constant 0 : i32
    %c0_i32_0 = arith.constant 0 : i32
    %c0_i32_1 = arith.constant 0 : i32
    return %c0_i32, %c0_i32_0 : i32, i32
  }
  func.func @transform_3(%arg0: i32) -> (i32, i32, i32) {
    %c0_i32 = arith.constant 0 : i32
    %c0_i32_0 = arith.constant 0 : i32
    %c0_i32_1 = arith.constant 0 : i32
    return %arg0, %c0_i32, %c0_i32_0 : i32, i32, i32
  }
  func.func @transform_4(%arg0: i32) -> (i32, i32, i32) {
    %c0_i32 = arith.constant 0 : i32
    %c0_i32_0 = arith.constant 0 : i32
    %c0_i32_1 = arith.constant 0 : i32
    return %arg0, %c0_i32, %c0_i32_0 : i32, i32, i32
  }
  func.func @transform_5(%arg0: i32) -> (i32, i32, i32) {
    %c0_i32 = arith.constant 0 : i32
    %c0_i32_0 = arith.constant 0 : i32
    %c0_i32_1 = arith.constant 0 : i32
    return %arg0, %c0_i32, %c0_i32_0 : i32, i32, i32
  }
}

module attributes {stable_mosaic.version = 11 : i64} {
  func.func @_fix2_bn_stats_kernel(%arg0: i32, %arg1: memref<4xf32, #tpu.memory_space<smem>>, %arg2: memref<1x384xf32, #tpu.memory_space<vmem>>, %arg3: memref<1x8x384xf32, #tpu.memory_space<vmem>>, %arg4: memref<1x8x2xf32, #tpu.memory_space<vmem>>) attributes {dimension_semantics = [#tpu.dimension_semantics<parallel>], iteration_bounds = array<i64: 2>, scalar_prefetch = 0 : i64, scratch_operands = 0 : i64, tpu.core_type = #tpu.core_type<tc>, window_params = [{transform_indices = @transform_0, window_bounds = array<i64: 4>}, {pipeline_mode = #tpu.pipeline_mode<synchronous>, transform_indices = @transform_1, window_bounds = array<i64: 1, 384>}, {transform_indices = @transform_2, window_bounds = array<i64: 1, 8, 384>}, {transform_indices = @transform_3, window_bounds = array<i64: 1, 8, 2>}]} {
    %c0 = arith.constant 0 : index
    %c0_0 = arith.constant 0 : index
    %c0_1 = arith.constant 0 : index
    %0 = vector.load %arg3[%c0, %c0_0, %c0_1] : memref<1x8x384xf32, #tpu.memory_space<vmem>>, vector<1x8x384xf32>
    %1 = vector.shape_cast %0 : vector<1x8x384xf32> to vector<8x384xf32>
    %c0_2 = arith.constant 0 : index
    %2 = memref.load %arg1[%c0_2] : memref<4xf32, #tpu.memory_space<smem>>
    %3 = vector.broadcast %2 : f32 to vector<8x384xf32>
    %4 = arith.mulf %1, %3 : vector<8x384xf32>
    %5 = math.roundeven %4 : vector<8x384xf32>
    %c1 = arith.constant 1 : index
    %6 = memref.load %arg1[%c1] : memref<4xf32, #tpu.memory_space<smem>>
    %7 = vector.broadcast %6 : f32 to vector<8x384xf32>
    %8 = arith.mulf %5, %7 : vector<8x384xf32>
    %c2 = arith.constant 2 : index
    %9 = memref.load %arg1[%c2] : memref<4xf32, #tpu.memory_space<smem>>
    %c3 = arith.constant 3 : index
    %10 = memref.load %arg1[%c3] : memref<4xf32, #tpu.memory_space<smem>>
    %11 = vector.broadcast %9 : f32 to vector<8x384xf32>
    %12 = arith.maximumf %11, %8 : vector<8x384xf32>
    %13 = vector.broadcast %10 : f32 to vector<8x384xf32>
    %14 = arith.minimumf %13, %12 : vector<8x384xf32>
    %c0_3 = arith.constant 0 : index
    %c0_4 = arith.constant 0 : index
    %15 = vector.load %arg2[%c0_3, %c0_4] : memref<1x384xf32, #tpu.memory_space<vmem>>, vector<1x384xf32>
    %16 = vector.broadcast %15 : vector<1x384xf32> to vector<8x384xf32>
    %17 = arith.mulf %14, %16 : vector<8x384xf32>
    %cst = arith.constant dense<0.000000e+00> : vector<8xf32>
    %18 = vector.multi_reduction <add>, %17, %cst [1] : vector<8x384xf32> to vector<8xf32>
    %19 = vector.shape_cast %18 : vector<8xf32> to vector<8x1xf32>
    %c0_5 = arith.constant 0 : index
    %c0_6 = arith.constant 0 : index
    %c0_7 = arith.constant 0 : index
    %20 = vector.load %arg4[%c0_5, %c0_6, %c0_7] : memref<1x8x2xf32, #tpu.memory_space<vmem>>, vector<1x8x1xf32>
    %21 = vector.shape_cast %20 : vector<1x8x1xf32> to vector<8x1xf32>
    %22 = vector.shape_cast %19 : vector<8x1xf32> to vector<1x8x1xf32>
    tpu.vector_store %arg4[%c0_5, %c0_6, %c0_7], %22 {strides = array<i32>} : memref<1x8x2xf32, #tpu.memory_space<vmem>>, vector<1x8x1xf32>,
    %23 = arith.mulf %17, %17 : vector<8x384xf32>
    %cst_8 = arith.constant dense<0.000000e+00> : vector<8xf32>
    %24 = vector.multi_reduction <add>, %23, %cst_8 [1] : vector<8x384xf32> to vector<8xf32>
    %25 = vector.shape_cast %24 : vector<8xf32> to vector<8x1xf32>
    %c0_9 = arith.constant 0 : index
    %c0_10 = arith.constant 0 : index
    %c1_11 = arith.constant 1 : index
    %26 = vector.load %arg4[%c0_9, %c0_10, %c1_11] : memref<1x8x2xf32, #tpu.memory_space<vmem>>, vector<1x8x1xf32>
    %27 = vector.shape_cast %26 : vector<1x8x1xf32> to vector<8x1xf32>
    %28 = vector.shape_cast %25 : vector<8x1xf32> to vector<1x8x1xf32>
    tpu.vector_store %arg4[%c0_9, %c0_10, %c1_11], %28 {strides = array<i32>} : memref<1x8x2xf32, #tpu.memory_space<vmem>>, vector<1x8x1xf32>,
    return
  }
  func.func @transform_0(%arg0: i32) -> i32 {
    %c0_i32 = arith.constant 0 : i32
    %c0_i32_0 = arith.constant 0 : i32
    return %c0_i32 : i32
  }
  func.func @transform_1(%arg0: i32) -> (i32, i32) {
    %c0_i32 = arith.constant 0 : i32
    %c0_i32_0 = arith.constant 0 : i32
    %c0_i32_1 = arith.constant 0 : i32
    return %c0_i32, %c0_i32_0 : i32, i32
  }
  func.func @transform_2(%arg0: i32) -> (i32, i32, i32) {
    %c0_i32 = arith.constant 0 : i32
    %c0_i32_0 = arith.constant 0 : i32
    %c0_i32_1 = arith.constant 0 : i32
    return %arg0, %c0_i32, %c0_i32_0 : i32, i32, i32
  }
  func.func @transform_3(%arg0: i32) -> (i32, i32, i32) {
    %c0_i32 = arith.constant 0 : i32
    %c0_i32_0 = arith.constant 0 : i32
    %c0_i32_1 = arith.constant 0 : i32
    return %arg0, %c0_i32, %c0_i32_0 : i32, i32, i32
  }
}

module attributes {stable_mosaic.version = 11 : i64} {
  func.func @_fix2_bn_fix3_kernel(%arg0: i32, %arg1: memref<8xf32, #tpu.memory_space<smem>>, %arg2: memref<8x1xf32, #tpu.memory_space<vmem>>, %arg3: memref<8x1xf32, #tpu.memory_space<vmem>>, %arg4: memref<1x8x384xf32, #tpu.memory_space<vmem>>, %arg5: memref<1x8x384xf32, #tpu.memory_space<vmem>>) attributes {dimension_semantics = [#tpu.dimension_semantics<parallel>], iteration_bounds = array<i64: 2>, scalar_prefetch = 0 : i64, scratch_operands = 0 : i64, tpu.core_type = #tpu.core_type<tc>, window_params = [{transform_indices = @transform_0, window_bounds = array<i64: 8>}, {pipeline_mode = #tpu.pipeline_mode<synchronous>, transform_indices = @transform_1, window_bounds = array<i64: 8, 1>}, {pipeline_mode = #tpu.pipeline_mode<synchronous>, transform_indices = @transform_2, window_bounds = array<i64: 8, 1>}, {transform_indices = @transform_3, window_bounds = array<i64: 1, 8, 384>}, {transform_indices = @transform_4, window_bounds = array<i64: 1, 8, 384>}]} {
    %c0 = arith.constant 0 : index
    %c0_0 = arith.constant 0 : index
    %c0_1 = arith.constant 0 : index
    %0 = vector.load %arg4[%c0, %c0_0, %c0_1] : memref<1x8x384xf32, #tpu.memory_space<vmem>>, vector<1x8x384xf32>
    %1 = vector.shape_cast %0 : vector<1x8x384xf32> to vector<8x384xf32>
    %c0_2 = arith.constant 0 : index
    %2 = memref.load %arg1[%c0_2] : memref<8xf32, #tpu.memory_space<smem>>
    %3 = vector.broadcast %2 : f32 to vector<8x384xf32>
    %4 = arith.mulf %1, %3 : vector<8x384xf32>
    %5 = math.roundeven %4 : vector<8x384xf32>
    %c1 = arith.constant 1 : index
    %6 = memref.load %arg1[%c1] : memref<8xf32, #tpu.memory_space<smem>>
    %7 = vector.broadcast %6 : f32 to vector<8x384xf32>
    %8 = arith.mulf %5, %7 : vector<8x384xf32>
    %c2 = arith.constant 2 : index
    %9 = memref.load %arg1[%c2] : memref<8xf32, #tpu.memory_space<smem>>
    %c3 = arith.constant 3 : index
    %10 = memref.load %arg1[%c3] : memref<8xf32, #tpu.memory_space<smem>>
    %11 = vector.broadcast %9 : f32 to vector<8x384xf32>
    %12 = arith.maximumf %11, %8 : vector<8x384xf32>
    %13 = vector.broadcast %10 : f32 to vector<8x384xf32>
    %14 = arith.minimumf %13, %12 : vector<8x384xf32>
    %c0_3 = arith.constant 0 : index
    %c0_4 = arith.constant 0 : index
    %15 = vector.load %arg2[%c0_3, %c0_4] : memref<8x1xf32, #tpu.memory_space<vmem>>, vector<8x1xf32>
    %16 = vector.broadcast %15 : vector<8x1xf32> to vector<8x384xf32>
    %17 = arith.mulf %16, %14 : vector<8x384xf32>
    %c0_5 = arith.constant 0 : index
    %c0_6 = arith.constant 0 : index
    %18 = vector.load %arg3[%c0_5, %c0_6] : memref<8x1xf32, #tpu.memory_space<vmem>>, vector<8x1xf32>
    %19 = vector.broadcast %18 : vector<8x1xf32> to vector<8x384xf32>
    %20 = arith.addf %17, %19 : vector<8x384xf32>
    %c4 = arith.constant 4 : index
    %21 = memref.load %arg1[%c4] : memref<8xf32, #tpu.memory_space<smem>>
    %22 = vector.broadcast %21 : f32 to vector<8x384xf32>
    %23 = arith.mulf %20, %22 : vector<8x384xf32>
    %24 = math.roundeven %23 : vector<8x384xf32>
    %c5 = arith.constant 5 : index
    %25 = memref.load %arg1[%c5] : memref<8xf32, #tpu.memory_space<smem>>
    %26 = vector.broadcast %25 : f32 to vector<8x384xf32>
    %27 = arith.mulf %24, %26 : vector<8x384xf32>
    %c6 = arith.constant 6 : index
    %28 = memref.load %arg1[%c6] : memref<8xf32, #tpu.memory_space<smem>>
    %c7 = arith.constant 7 : index
    %29 = memref.load %arg1[%c7] : memref<8xf32, #tpu.memory_space<smem>>
    %30 = vector.broadcast %28 : f32 to vector<8x384xf32>
    %31 = arith.maximumf %30, %27 : vector<8x384xf32>
    %32 = vector.broadcast %29 : f32 to vector<8x384xf32>
    %33 = arith.minimumf %32, %31 : vector<8x384xf32>
    %c0_7 = arith.constant 0 : index
    %c0_8 = arith.constant 0 : index
    %c0_9 = arith.constant 0 : index
    %34 = vector.load %arg5[%c0_7, %c0_8, %c0_9] : memref<1x8x384xf32, #tpu.memory_space<vmem>>, vector<1x8x384xf32>
    %35 = vector.shape_cast %34 : vector<1x8x384xf32> to vector<8x384xf32>
    %36 = vector.shape_cast %33 : vector<8x384xf32> to vector<1x8x384xf32>
    tpu.vector_store %arg5[%c0_7, %c0_8, %c0_9], %36 {strides = array<i32>} : memref<1x8x384xf32, #tpu.memory_space<vmem>>, vector<1x8x384xf32>,
    return
  }
  func.func @transform_0(%arg0: i32) -> i32 {
    %c0_i32 = arith.constant 0 : i32
    %c0_i32_0 = arith.constant 0 : i32
    return %c0_i32 : i32
  }
  func.func @transform_1(%arg0: i32) -> (i32, i32) {
    %c0_i32 = arith.constant 0 : i32
    %c0_i32_0 = arith.constant 0 : i32
    %c0_i32_1 = arith.constant 0 : i32
    return %c0_i32, %c0_i32_0 : i32, i32
  }
  func.func @transform_2(%arg0: i32) -> (i32, i32) {
    %c0_i32 = arith.constant 0 : i32
    %c0_i32_0 = arith.constant 0 : i32
    %c0_i32_1 = arith.constant 0 : i32
    return %c0_i32, %c0_i32_0 : i32, i32
  }
  func.func @transform_3(%arg0: i32) -> (i32, i32, i32) {
    %c0_i32 = arith.constant 0 : i32
    %c0_i32_0 = arith.constant 0 : i32
    %c0_i32_1 = arith.constant 0 : i32
    return %arg0, %c0_i32, %c0_i32_0 : i32, i32, i32
  }
  func.func @transform_4(%arg0: i32) -> (i32, i32, i32) {
    %c0_i32 = arith.constant 0 : i32
    %c0_i32_0 = arith.constant 0 : i32
    %c0_i32_1 = arith.constant 0 : i32
    return %arg0, %c0_i32, %c0_i32_0 : i32, i32, i32
  }
}

</mosaic_0001>

<bundles_post_ra>
// kernel: relu_conv_bn.4
= control target key start
LH: loop header
LB: loop body
LE: loop exit
PB: predicated region body
PF: predicated region fallthrough
CT: control target
= control target key end

     0   :  { %8 = vsyncpa [#allocation3], 0  ;;  %s415_s12 = smov 0   ;;  %s462_s0 = inlined_call_operand.vmem [shape: f32[4], index: 0, kind: input, shape index: {}]   ;;  %s463_s1 = inlined_call_operand.vmem [shape: f32[1,384], index: 1, kind: input, shape index: {}]   ;;  %s464_s2 = inlined_call_operand.vmem [shape: f32[2,8,384], index: 2, kind: input, shape index: {}]   ;;  %s465_s3 = inlined_call_operand.vmem [shape: f32[2,8,2], index: 3, kind: output, shape index: {}]  }
   0x1 LB: > { %s309_s13 = sadd.s32 4294967295, %s392_s12   ;;  %p311_p0 = scmp.ge.s32.totalorder %s392_s12, 1  ;;  %s392_s12 = sphi %s415_s12, %s14_s12  }
   0x2   : > { %p113_p1 = scmp.lt.s32.totalorder %s392_s12, 3  ;;  %s126_s16 = sshll.u32 %s462_s0, 4  ;;  %s127_s16 = int_to_ptr.vmem [resolvable:$true] %s126_s16 }
   0x3   : > { %p356_p3 = scmp.eq.s32.totalorder %s309_s13, 0  ;;  %s367_s18 = scalar_lea.vmem %s127_s16, 16 }
   0x4   : > { %p426_p2 = pnand %p311_p0, %p113_p1  ;;  %p368_p6 = scmp.ne.s32.totalorder %s127_s16, %s367_s18 }
   0x5   : > { %p375_p10 = scmp.lt.s32.totalorder %s127_s16, %s127_s16  ;;  %p376_p11 = scmp.lt.s32.totalorder %s367_s18, %s367_s18 }
   0x6   : > { %p352_p4 = pneg %p426_p2 }
   0x7   : > { %p377_p12 = por %p376_p11, %p375_p10 }
   0x8   : > { %p353_p5 = pnand %p356_p3, %p352_p4 }
   0xa   : > { %p369_p7 = pneg %p353_p5 }
   0xc   : > { %p370_p8 = pnand %p369_p7, %p368_p6 }
   0xe   : > { %p371_p9 = pneg %p370_p8 }
  0x10   : > { %p378_p13 = pnand %p377_p12, %p371_p9 }
  0x12   : > { %381 = shalt.err (!%p378_p13)
}
  0x13   : > { %s394_s19 = smov [#allocation2]   ;;  %150 = sbr.rel (%p426_p2) target bundleno = 200 (0xc8), region = 32 }
  0x14   : > { %355 = dma.vmem_to_smem (!%p353_p5), %s127_s16, 16, %s394_s19, [#allocation3]  }
  0x18   : > { %387 = dma.done.wait (%p356_p3), [#allocation3], 16  }
  0x19   : > { %389 = vsyncadd (%p356_p3), [#allocation3], 4294967280 }
  0x1a   : > { %156 = sfence }
  0x1b   : > { %p174_p0 = scmp.lt.s32.totalorder %s309_s13, 1  ;;  %s186_s20 = sld [smem:[#allocation2]]  ;;  %v211_v4 = vlaneseq  ;;  %v209_v32 = vld [vmem:[%s463_s1] sm:$0x7]  ;;  %vm233_vm3 = vcmask 7168   ;;  %vm242_vm4 = vcmask 15368  }
  0x1c   : > { %s318_s25 = sld [smem:[#allocation2 + $0x1]] }
  0x1d   : > { %s470_s13 = smov (!%p174_p0, %s309_s13), 1  ;;  %s319_s26 = sld [smem:[#allocation2 + $0x2]]  ;;  %v212_v12 = vshrl.u32 %v211_v4, 7 }
  0x1e   : > { %s323_s21 = smul.u32 24, %s470_s13  ;;  %s443_s27 = sld [smem:[#allocation2 + $0x3]] }
  0x1f   : > { %v213_v29 = vsub.s32 0, %v212_v12  ;;  %v217_v33 = vsub.s32 1, %v212_v12  ;;  %v221_v34 = vsub.s32 2, %v212_v12  ;;  %s317_s30 = sshll.u32 %s470_s13, 3 }
  0x20   : > { %s178_s24 = scalar_lea.vmem %s464_s2, %s323_s21  ;;  %s182_s6 = scalar_lea.vmem %s465_s3, %s317_s30 }
  0x21   : > { %v187_v0 = vstv %s186_s20  ;;  %v183_v1 = vld [vmem:[%s178_s24] sm:$0xff]  ;;  %v184_v2 = vld [vmem:[%s178_s24 + $0x8] sm:$0xff]  ;;  %v185_v3 = vld [vmem:[%s178_s24 + $0x10] sm:$0xff]  ;;  %v214_v42 = vrot.slane %v209_v32, %v213_v29  ;;  %v218_v45 = vrot.slane %v209_v32, %v217_v33  ;;  %v222_v46 = vrot.slane %v209_v32, %v221_v34 }
  0x22   : > { %v188_v5 = vmul.f32 %v187_v0, %v183_v1  ;;  %v189_v6 = vmul.f32 %v187_v0, %v184_v2  ;;  %v190_v7 = vmul.f32 %v187_v0, %v185_v3  ;;  %v195_v26 = vstv %s318_s25 }
  0x23   : > { %v201_v31 = vstv %s319_s26 }
  0x24   : > { %v326_v8 = vcvt.f32.s32 %v188_v5  ;;  %v324_v9 = vand.u32 2147483647, %v188_v5  ;;  %v334_v10 = vcvt.f32.s32 %v189_v6  ;;  %v342_v11 = vcvt.f32.s32 %v190_v7 }
  0x25   : > { %v329_v14 = vand.u32 2147483648, %v188_v5  ;;  %v332_v15 = vand.u32 2147483647, %v189_v6  ;;  %v340_v16 = vand.u32 2147483647, %v190_v7  ;;  %v337_v18 = vand.u32 2147483648, %v189_v6 }
  0x26   : > { %v327_v13 = vcvt.s32.f32 %v326_v8  ;;  %v335_v17 = vcvt.s32.f32 %v334_v10  ;;  %v343_v19 = vcvt.s32.f32 %v342_v11  ;;  %v345_v20 = vand.u32 2147483648, %v190_v7 }
  0x27   : > { %vm445_vm0 = vcmp.lt.f32.partialorder %v324_v9, 8388608.0  ;;  %vm333_vm1 = vcmp.lt.f32.partialorder %v332_v15, 8388608.0  ;;  %vm341_vm2 = vcmp.lt.f32.partialorder %v340_v16, 8388608.0  ;;  %v205_v40 = vstv %s443_s27 }
  0x28   : > { %v328_v21 = vand.u32 2147483647, %v327_v13  ;;  %v336_v23 = vand.u32 2147483647, %v335_v17  ;;  %v344_v24 = vand.u32 2147483647, %v343_v19 }
  0x2a   : > { %v330_v25 = vor.u32 %v329_v14, %v328_v21  ;;  %v338_v27 = vor.u32 %v337_v18, %v336_v23  ;;  %v346_v28 = vor.u32 %v345_v20, %v344_v24 }
  0x2c   : > { %v331_v30 = vsel %vm445_vm0, %v330_v25, %v188_v5  ;;  %v339_v35 = vsel %vm333_vm1, %v338_v27, %v189_v6  ;;  %v347_v36 = vsel %vm341_vm2, %v346_v28, %v190_v7 }
  0x2d   : > { %v196_v37 = vmul.f32 %v331_v30, %v195_v26  ;;  %v197_v38 = vmul.f32 %v339_v35, %v195_v26  ;;  %v198_v39 = vmul.f32 %v347_v36, %v195_v26 }
  0x2f   : > { %v202_v41 = vmax.f32 %v201_v31, %v196_v37  ;;  %v203_v43 = vmax.f32 %v201_v31, %v197_v38  ;;  %v204_v44 = vmax.f32 %v201_v31, %v198_v39 }
  0x31   : > { %v206_v47 = vmin.f32 %v205_v40, %v202_v41  ;;  %v207_v48 = vmin.f32 %v205_v40, %v203_v43  ;;  %v208_v49 = vmin.f32 %v205_v40, %v204_v44 }
  0x33   : > { %v226_v50 = vmul.f32 %v214_v42, %v206_v47  ;;  %v227_v51 = vmul.f32 %v218_v45, %v207_v48  ;;  %v228_v52 = vmul.f32 %v222_v46, %v208_v49 }
  0x35   : > { %v235_v53 = vmul.f32 %v226_v50, %v226_v50  ;;  %v229_v54 = vadd.f32 %v227_v51, %v226_v50  ;;  %v236_v55 = vmul.f32 %v227_v51, %v227_v51  ;;  %v237_v56 = vmul.f32 %v228_v52, %v228_v52 }
  0x37   : > { %v230_v57 = vadd.f32 %v229_v54, %v228_v52  ;;  %v238_v58 = vadd.f32 %v236_v55, %v235_v53 }
  0x39   : > { %231 = vadd.xlane.f32.xlu0 %v230_v57  ;;  %v239_v59 = vadd.f32 %v238_v58, %v237_v56 }
  0x3d   : > { %240 = vadd.xlane.f32.xlu0 %v239_v59 }
  0xc2   : > { %v232_v60 = vpop.xlane.xlu0 %231 }
  0xc3   : > { %234 = vst.msk [vmem:[%s182_s6] sm:$0xff] %vm233_vm3, %v232_v60 }
  0xc6   : > { %v241_v61 = vpop.xlane.xlu0 %240 }
  0xc7   : > { %243 = vst.msk [vmem:[%s182_s6] sm:$0xff] %vm242_vm4, %v241_v61 }
  0xc8 PF: > { %s14_s12 = sadd.s32 1, %s392_s12  }
  0xc9   : > { %p11_p1 = scmp.ge.s32.totalorder %s14_s12, 4  }
  0xcb   :  { %13 = sbr.rel (!%p11_p1) target bundleno = 1 (0x1), region = 67 }
  0xd0   :  { %263 = vsyncpa [#allocation3], 1 }
  0xd1   :  { %265 = vsyncpa [#allocation3 + $0x1], 1 }

// kernel: relu_conv_bn.5
= control target key start
LH: loop header
LB: loop body
LE: loop exit
PB: predicated region body
PF: predicated region fallthrough
CT: control target
= control target key end

     0   :  { %9 = vsyncpa [#allocation3], 0  ;;  %s491_s15 = smov 0   ;;  %s543_s0 = inlined_call_operand.vmem [shape: f32[8], index: 0, kind: input, shape index: {}]   ;;  %s544_s1 = inlined_call_operand.vmem [shape: f32[8,1], index: 1, kind: input, shape index: {}]   ;;  %s545_s2 = inlined_call_operand.vmem [shape: f32[8,1], index: 2, kind: input, shape index: {}]   ;;  %s546_s3 = inlined_call_operand.vmem [shape: f32[2,8,384], index: 3, kind: input, shape index: {}]   ;;  %s547_s4 = inlined_call_operand.vmem [shape: f32[2,8,384], index: 4, kind: output, shape index: {}]  }
   0x1 LB: > { %s497_s16 = sadd.s32 4294967295, %s462_s15   ;;  %p351_p0 = scmp.ge.s32.totalorder %s462_s15, 1  ;;  %s462_s15 = sphi %s491_s15, %s15_s15  }
   0x2   : > { %p135_p1 = scmp.lt.s32.totalorder %s462_s15, 3  ;;  %s148_s19 = sshll.u32 %s543_s0, 4  ;;  %s149_s19 = int_to_ptr.vmem [resolvable:$true] %s148_s19 }
   0x3   : > { %p424_p3 = scmp.eq.s32.totalorder %s497_s16, 0  ;;  %s437_s21 = scalar_lea.vmem %s149_s19, 16 }
   0x4   : > { %p504_p2 = pnand %p351_p0, %p135_p1  ;;  %p438_p6 = scmp.ne.s32.totalorder %s149_s19, %s437_s21 }
   0x5   : > { %p445_p10 = scmp.lt.s32.totalorder %s149_s19, %s149_s19  ;;  %p446_p11 = scmp.lt.s32.totalorder %s437_s21, %s437_s21 }
   0x6   : > { %p420_p4 = pneg %p504_p2 }
   0x7   : > { %p447_p12 = por %p446_p11, %p445_p10 }
   0x8   : > { %p421_p5 = pnand %p424_p3, %p420_p4 }
   0xa   : > { %p439_p7 = pneg %p421_p5 }
   0xc   : > { %p440_p8 = pnand %p439_p7, %p438_p6 }
   0xe   : > { %p441_p9 = pneg %p440_p8 }
  0x10   : > { %p448_p13 = pnand %p447_p12, %p441_p9 }
  0x12   : > { %451 = shalt.err (!%p448_p13)
}
  0x13   : > { %s464_s22 = smov [#allocation2]   ;;  %175 = sbr.rel (%p504_p2) target bundleno = 178 (0xb2), region = 36 }
  0x14   : > { %423 = dma.vmem_to_smem (!%p421_p5), %s149_s19, 16, %s464_s22, [#allocation3]  }
  0x18   : > { %457 = dma.done.wait (%p424_p3), [#allocation3], 16  }
  0x19   : > { %459 = vsyncadd (%p424_p3), [#allocation3], 4294967280 }
  0x1a   : > { %181 = sfence }
  0x1b   : > { %v238_v0 = vld [vmem:[%s544_s1] sm:$0xff]  ;;  %v465_v1 = vmov 0   ;;  %p202_p0 = scmp.lt.s32.totalorder %s497_s16, 1  ;;  %s215_s27 = sld [smem:[#allocation2]] }
  0x1c   : > { %436 = vset.pattern.permute.xlu0 %v465_v1  ;;  %v247_v2 = vld [vmem:[%s545_s2] sm:$0xff]  ;;  %s358_s6 = sld [smem:[#allocation2 + $0x1]] }
  0x1d   : > { %241 = vperm.xlu0 %436, %v238_v0   ;;  %s550_s16 = smov (!%p202_p0, %s497_s16), 1  ;;  %s359_s7 = sld [smem:[#allocation2 + $0x2]] }
  0x1e   : > { %s367_s28 = smul.u32 24, %s550_s16  ;;  %s360_s8 = sld [smem:[#allocation2 + $0x3]] }
  0x1f   : > { %s361_s9 = sld [smem:[#allocation2 + $0x4]] }
  0x20   : > { %s206_s5 = scalar_lea.vmem %s546_s3, %s367_s28  ;;  %s362_s10 = sld [smem:[#allocation2 + $0x5]] }
  0x21   : > { %250 = vperm.xlu0 %436, %v247_v2   ;;  %v212_v3 = vld [vmem:[%s206_s5] sm:$0xff]  ;;  %v213_v4 = vld [vmem:[%s206_s5 + $0x8] sm:$0xff]  ;;  %v214_v5 = vld [vmem:[%s206_s5 + $0x10] sm:$0xff]  ;;  %v216_v6 = vstv %s215_s27  ;;  %s363_s11 = sld [smem:[#allocation2 + $0x6]]  ;;  %s211_s17 = scalar_lea.vmem %s547_s4, %s367_s28 }
  0x22   : > { %v217_v7 = vmul.f32 %v216_v6, %v212_v3  ;;  %v218_v8 = vmul.f32 %v216_v6, %v213_v4  ;;  %v219_v9 = vmul.f32 %v216_v6, %v214_v5  ;;  %v224_v31 = vstv %s358_s6  ;;  %s364_s12 = sld [smem:[#allocation2 + $0x7]] }
  0x23   : > { %v230_v35 = vstv %s359_s7 }
  0x24   : > { %v370_v10 = vcvt.f32.s32 %v217_v7  ;;  %v378_v11 = vcvt.f32.s32 %v218_v8  ;;  %v386_v12 = vcvt.f32.s32 %v219_v9  ;;  %v373_v16 = vand.u32 2147483648, %v217_v7 }
  0x25   : > { %v381_v17 = vand.u32 2147483648, %v218_v8  ;;  %v389_v18 = vand.u32 2147483648, %v219_v9  ;;  %v368_v22 = vand.u32 2147483647, %v217_v7  ;;  %v376_v23 = vand.u32 2147483647, %v218_v8 }
  0x26   : > { %v371_v13 = vcvt.s32.f32 %v370_v10  ;;  %v379_v14 = vcvt.s32.f32 %v378_v11  ;;  %v387_v15 = vcvt.s32.f32 %v386_v12  ;;  %v384_v24 = vand.u32 2147483647, %v219_v9 }
  0x27   : > { %vm369_vm0 = vcmp.lt.f32.partialorder %v368_v22, 8388608.0  ;;  %vm377_vm1 = vcmp.lt.f32.partialorder %v376_v23, 8388608.0  ;;  %v234_v39 = vstv %s360_s8  ;;  %v257_v47 = vstv %s361_s9 }
  0x28   : > { %v372_v19 = vand.u32 2147483647, %v371_v13  ;;  %v380_v20 = vand.u32 2147483647, %v379_v14  ;;  %v388_v21 = vand.u32 2147483647, %v387_v15  ;;  %v265_v6 = vstv %s362_s10 }
  0x29   : > { %vm385_vm2 = vcmp.lt.f32.partialorder %v384_v24, 8388608.0  ;;  %v271_v10 = vstv %s363_s11  ;;  %v275_v15 = vstv %s364_s12 }
  0x2a   : > { %v374_v25 = vor.u32 %v373_v16, %v372_v19  ;;  %v382_v26 = vor.u32 %v381_v17, %v380_v20  ;;  %v390_v27 = vor.u32 %v389_v18, %v388_v21 }
  0x2c   : > { %v375_v28 = vsel %vm369_vm0, %v374_v25, %v217_v7  ;;  %v383_v29 = vsel %vm377_vm1, %v382_v26, %v218_v8  ;;  %v391_v30 = vsel %vm385_vm2, %v390_v27, %v219_v9 }
  0x2d   : > { %v225_v32 = vmul.f32 %v375_v28, %v224_v31  ;;  %v226_v33 = vmul.f32 %v383_v29, %v224_v31  ;;  %v227_v34 = vmul.f32 %v391_v30, %v224_v31 }
  0x2f   : > { %v231_v36 = vmax.f32 %v230_v35, %v225_v32  ;;  %v232_v37 = vmax.f32 %v230_v35, %v226_v33  ;;  %v233_v38 = vmax.f32 %v230_v35, %v227_v34 }
  0x31   : > { %v235_v40 = vmin.f32 %v234_v39, %v231_v36  ;;  %v236_v41 = vmin.f32 %v234_v39, %v232_v37  ;;  %v237_v42 = vmin.f32 %v234_v39, %v233_v38 }
  0x98   : > { %v242_v43 = vpop.permute.xlu0 %241 }
  0x99   : > { %v244_v44 = vmul.f32 %v242_v43, %v235_v40  ;;  %v245_v45 = vmul.f32 %v242_v43, %v236_v41  ;;  %v246_v46 = vmul.f32 %v242_v43, %v237_v42 }
  0x9c   : > { %v251_v48 = vpop.permute.xlu0 %250 }
  0x9d   : > { %v253_v49 = vadd.f32 %v251_v48, %v244_v44  ;;  %v254_v50 = vadd.f32 %v251_v48, %v245_v45  ;;  %v255_v51 = vadd.f32 %v251_v48, %v246_v46 }
  0x9f   : > { %v258_v52 = vmul.f32 %v257_v47, %v253_v49  ;;  %v259_v53 = vmul.f32 %v257_v47, %v254_v50  ;;  %v260_v54 = vmul.f32 %v257_v47, %v255_v51 }
  0xa1   : > { %v394_v55 = vcvt.f32.s32 %v258_v52  ;;  %v402_v56 = vcvt.f32.s32 %v259_v53  ;;  %v410_v57 = vcvt.f32.s32 %v260_v54  ;;  %v392_v59 = vand.u32 2147483647, %v258_v52 }
  0xa2   : > { %v397_v60 = vand.u32 2147483648, %v258_v52  ;;  %v400_v0 = vand.u32 2147483647, %v259_v53  ;;  %v408_v1 = vand.u32 2147483647, %v260_v54  ;;  %v405_v3 = vand.u32 2147483648, %v259_v53 }
  0xa3   : > { %v395_v58 = vcvt.s32.f32 %v394_v55  ;;  %v403_v61 = vcvt.s32.f32 %v402_v56  ;;  %v411_v62 = vcvt.s32.f32 %v410_v57  ;;  %v413_v5 = vand.u32 2147483648, %v260_v54 }
  0xa4   : > { %vm393_vm3 = vcmp.lt.f32.partialorder %v392_v59, 8388608.0  ;;  %vm401_vm4 = vcmp.lt.f32.partialorder %v400_v0, 8388608.0  ;;  %vm409_vm5 = vcmp.lt.f32.partialorder %v408_v1, 8388608.0 }
  0xa5   : > { %v396_v63 = vand.u32 2147483647, %v395_v58  ;;  %v404_v2 = vand.u32 2147483647, %v403_v61  ;;  %v412_v4 = vand.u32 2147483647, %v411_v62 }
  0xa7   : > { %v398_v7 = vor.u32 %v397_v60, %v396_v63  ;;  %v406_v8 = vor.u32 %v405_v3, %v404_v2  ;;  %v414_v9 = vor.u32 %v413_v5, %v412_v4 }
  0xa9   : > { %v399_v11 = vsel %vm393_vm3, %v398_v7, %v258_v52  ;;  %v407_v12 = vsel %vm401_vm4, %v406_v8, %v259_v53  ;;  %v415_v13 = vsel %vm409_vm5, %v414_v9, %v260_v54 }
  0xaa   : > { %v266_v14 = vmul.f32 %v399_v11, %v265_v6  ;;  %v267_v16 = vmul.f32 %v407_v12, %v265_v6  ;;  %v268_v17 = vmul.f32 %v415_v13, %v265_v6 }
  0xac   : > { %v272_v18 = vmax.f32 %v271_v10, %v266_v14  ;;  %v273_v19 = vmax.f32 %v271_v10, %v267_v16  ;;  %v274_v20 = vmax.f32 %v271_v10, %v268_v17 }
  0xae   : > { %v276_v21 = vmin.f32 %v275_v15, %v272_v18  ;;  %v277_v22 = vmin.f32 %v275_v15, %v273_v19  ;;  %v278_v23 = vmin.f32 %v275_v15, %v274_v20 }
  0xb0   : > { %279 = vst [vmem:[%s211_s17] sm:$0xff] %v276_v21  ;;  %280 = vst [vmem:[%s211_s17 + $0x8] sm:$0xff] %v277_v22 }
  0xb1   : > { %281 = vst [vmem:[%s211_s17 + $0x10] sm:$0xff] %v278_v23 }
  0xb2 PF: > { %s15_s15 = sadd.s32 1, %s462_s15  }
  0xb3   : > { %p12_p1 = scmp.ge.s32.totalorder %s15_s15, 4  }
  0xb5   :  { %14 = sbr.rel (!%p12_p1) target bundleno = 1 (0x1), region = 71 }
  0xba   :  { %303 = vsyncpa [#allocation3], 1 }
  0xbb   :  { %305 = vsyncpa [#allocation3 + $0x1], 1 }

// kernel: relu_conv_bn.3
= control target key start
LH: loop header
LB: loop body
LE: loop exit
PB: predicated region body
PF: predicated region fallthrough
CT: control target
= control target key end

     0   :  { %11 = vsyncpa [#allocation3], 0  ;;  %s2184_s18 = smov 0   ;;  %s2388_s0 = inlined_call_operand.vmem [shape: f32[8], index: 0, kind: input, shape index: {}]   ;;  %s2389_s1 = inlined_call_operand.vmem [shape: f32[9,8,8], index: 1, kind: input, shape index: {}]   ;;  %s2390_s2 = inlined_call_operand.vmem [shape: f32[1,384], index: 2, kind: input, shape index: {}]   ;;  %s2391_s3 = inlined_call_operand.vmem [shape: f32[2,8,512], index: 3, kind: input, shape index: {}]   ;;  %s2392_s4 = inlined_call_operand.vmem [shape: f32[2,8,384], index: 4, kind: output, shape index: {0}]   ;;  %s2393_s5 = inlined_call_operand.vmem [shape: f32[2,8,2], index: 5, kind: output, shape index: {1}]  }
   0x1 LB: > { %s1910_s19 = sadd.s32 4294967295, %s2140_s18   ;;  %p1912_p0 = scmp.ge.s32.totalorder %s2140_s18, 1  ;;  %s2140_s18 = sphi %s2184_s18, %s17_s18  }
   0x2   : > { %p163_p1 = scmp.lt.s32.totalorder %s2140_s18, 3  ;;  %s176_s22 = sshll.u32 %s2388_s0, 4  ;;  %s177_s22 = int_to_ptr.vmem [resolvable:$true] %s176_s22 }
   0x3   : > { %p2093_p3 = scmp.eq.s32.totalorder %s1910_s19, 0  ;;  %s2115_s24 = scalar_lea.vmem %s177_s22, 16 }
   0x4   : > { %p2195_p2 = pnand %p1912_p0, %p163_p1  ;;  %p2116_p6 = scmp.ne.s32.totalorder %s177_s22, %s2115_s24 }
   0x5   : > { %p2123_p10 = scmp.lt.s32.totalorder %s177_s22, %s177_s22  ;;  %p2124_p11 = scmp.lt.s32.totalorder %s2115_s24, %s2115_s24 }
   0x6   : > { %p2089_p4 = pneg %p2195_p2 }
   0x7   : > { %p2125_p12 = por %p2124_p11, %p2123_p10 }
   0x8   : > { %p2090_p5 = pnand %p2093_p3, %p2089_p4 }
   0xa   : > { %p2117_p7 = pneg %p2090_p5 }
   0xc   : > { %p2118_p8 = pnand %p2117_p7, %p2116_p6 }
   0xe   : > { %p2119_p9 = pneg %p2118_p8 }
  0x10   : > { %p2126_p13 = pnand %p2125_p12, %p2119_p9 }
  0x12   : > { %2129 = shalt.err (!%p2126_p13)
}
  0x13   : > { %s2142_s25 = smov [#allocation2]   ;;  %203 = sbr.rel (%p2195_p2) target bundleno = 589 (0x24d), region = 36 }
  0x14   : > { %2092 = dma.vmem_to_smem (!%p2090_p5), %s177_s22, 16, %s2142_s25, [#allocation3]  }
  0x18   : > { %2135 = dma.done.wait (%p2093_p3), [#allocation3], 16  }
  0x19   : > { %2137 = vsyncadd (%p2093_p3), [#allocation3], 4294967280 }
  0x1a   : > { %209 = sfence }
  0x1b   : > { %p236_p0 = scmp.lt.s32.totalorder %s1910_s19, 1  ;;  %s254_s26 = sld [smem:[#allocation2]]  ;;  %vm2145_vm8 = vmmov 0   ;;  %vm329_vm9 = vcmask 1039360   ;;  %vm336_vm10 = vcmask 64512   ;;  %vm635_vm11 = vcmask 1031168  }
  0x1c   : > { %s1921_s6 = sld [smem:[#allocation2 + $0x1]]  ;;  %s2144_s13 = smov 127   ;;  %vm799_vm12 = vcmask 900096   ;;  %vm963_vm13 = vcmask 891904   ;;  %vm1127_vm14 = vcmask 883712   ;;  %vm1291_vm15 = vcmask 752640  }
  0x1d   : > { %s2404_s19 = smov (!%p236_p0, %s1910_s19), 1  ;;  %s1922_s7 = sld [smem:[#allocation2 + $0x2]] }
  0x1e   : > { %s1956_s27 = sshll.u32 %s2404_s19, 5  ;;  %s1923_s8 = sld [smem:[#allocation2 + $0x3]] }
  0x1f   : > { %s240_s30 = scalar_lea.vmem %s2391_s3, %s1956_s27  ;;  %s1924_s9 = sld [smem:[#allocation2 + $0x4]] }
  0x20   : > { %v251_v0 = vld [vmem:[%s240_s30 + $0x8] sm:$0xff]  ;;  %v250_v2 = vld [vmem:[%s240_s30] sm:$0xff]  ;;  %v252_v3 = vld [vmem:[%s240_s30 + $0x10] sm:$0xff]  ;;  %s1925_s10 = sld [smem:[#allocation2 + $0x5]]  ;;  %s2146_s14 = smov 126  }
  0x21   : > { %v255_v1 = vstv %s254_s26  ;;  %v253_v7 = vld [vmem:[%s240_s30 + $0x18] sm:$0xff]  ;;  %s1926_s11 = sld [smem:[#allocation2 + $0x6]]  ;;  %s2147_s15 = smov 110  }
  0x22   : > { %v257_v4 = vmul.f32 %v255_v1, %v251_v0  ;;  %v256_v5 = vmul.f32 %v255_v1, %v250_v2  ;;  %v258_v6 = vmul.f32 %v255_v1, %v252_v3  ;;  %v259_v14 = vmul.f32 %v255_v1, %v253_v7  ;;  %s2218_s12 = sld [smem:[#allocation2 + $0x7]]  ;;  %s2148_s16 = smov 109  }
  0x23   : > { %v265_v25 = vstv %s1921_s6  ;;  %v272_v27 = vstv %s1922_s7  ;;  %s2149_s17 = smov 108   ;;  %s2150_s20 = smov 92  }
  0x24   : > { %v2031_v8 = vcvt.f32.s32 %v257_v4  ;;  %v2029_v9 = vand.u32 2147483647, %v257_v4  ;;  %v2023_v10 = vcvt.f32.s32 %v256_v5  ;;  %v2034_v12 = vand.u32 2147483648, %v257_v4  ;;  %s2151_s21 = smov 91   ;;  %s2152_s22 = smov 90  }
  0x25   : > { %v2021_v13 = vand.u32 2147483647, %v256_v5  ;;  %v2026_v16 = vand.u32 2147483648, %v256_v5  ;;  %v2039_v17 = vcvt.f32.s32 %v258_v6  ;;  %v2037_v19 = vand.u32 2147483647, %v258_v6  ;;  %s1920_s24 = sshll.u32 %s2404_s19, 3 }
  0x26   : > { %v2032_v11 = vcvt.s32.f32 %v2031_v8  ;;  %v2024_v15 = vcvt.s32.f32 %v2023_v10  ;;  %vm2212_vm0 = vcmp.lt.f32.partialorder %v2029_v9, 8388608.0  ;;  %v2042_v23 = vand.u32 2147483648, %v258_v6  ;;  %v1939_v10 = vld [vmem:[%s2389_s1 + $0x20] sm:$0xff]  ;;  %s249_s27 = scalar_lea.vmem %s2393_s5, %s1920_s24 }
  0x27   : > { %v2040_v22 = vcvt.s32.f32 %v2039_v17  ;;  %vm2022_vm1 = vcmp.lt.f32.partialorder %v2021_v13, 8388608.0  ;;  %v2047_v26 = vcvt.f32.s32 %v259_v14  ;;  %v2045_v30 = vand.u32 2147483647, %v259_v14 }
  0x28   : > { %v2033_v18 = vand.u32 2147483647, %v2032_v11  ;;  %v2025_v21 = vand.u32 2147483647, %v2024_v15  ;;  %vm2038_vm2 = vcmp.lt.f32.partialorder %v2037_v19, 8388608.0  ;;  %v2050_v33 = vand.u32 2147483648, %v259_v14 }
  0x29   : > { %v2041_v29 = vand.u32 2147483647, %v2040_v22  ;;  %v2048_v32 = vcvt.s32.f32 %v2047_v26  ;;  %v277_v37 = vstv %s1923_s8  ;;  %vm2046_vm3 = vcmp.lt.f32.partialorder %v2045_v30, 8388608.0 }
  0x2a   : > { %v2035_v24 = vor.u32 %v2034_v12, %v2033_v18  ;;  %v2027_v28 = vor.u32 %v2026_v16, %v2025_v21  ;;  %v287_v46 = vstv %s1924_s9  ;;  %v297_v7 = vstv %s1925_s10 }
  0x2b   : > { %v2043_v36 = vor.u32 %v2042_v23, %v2041_v29  ;;  %v2049_v39 = vand.u32 2147483647, %v2048_v32  ;;  %v304_v15 = vstv %s1926_s11  ;;  %v309_v29 = vstv %s2218_s12 }
  0x2c   : > { %v2036_v31 = vsel %vm2212_vm0, %v2035_v24, %v257_v4  ;;  %v2028_v35 = vsel %vm2022_vm1, %v2027_v28, %v256_v5  ;;  %vm1455_vm0 = vcmask 744448   ;;  %vm1619_vm1 = vcmask 736256  }
  0x2d   : > { %v267_v34 = vmul.f32 %v2036_v31, %v265_v25  ;;  %v266_v38 = vmul.f32 %v2028_v35, %v265_v25  ;;  %v2044_v41 = vsel %vm2038_vm2, %v2043_v36, %v258_v6  ;;  %v2051_v44 = vor.u32 %v2050_v33, %v2049_v39 }
  0x2e   : > { %v268_v43 = vmul.f32 %v2044_v41, %v265_v25 }
  0x2f   : > { %v274_v40 = vmax.f32 %v272_v27, %v267_v34  ;;  %v273_v42 = vmax.f32 %v272_v27, %v266_v38  ;;  %v2052_v49 = vsel %vm2046_vm3, %v2051_v44, %v259_v14 }
  0x30   : > { %v275_v48 = vmax.f32 %v272_v27, %v268_v43  ;;  %v269_v51 = vmul.f32 %v2052_v49, %v265_v25  ;;  %v2143_v25 = vmov 0.0  }
  0x31   : > { %v279_v45 = vmin.f32 %v277_v37, %v274_v40  ;;  %v278_v47 = vmin.f32 %v277_v37, %v273_v42  ;;  %1975 = vmatprep.subr.mxu1 %v2143_v25  ;;  %404 = vmatprep.mubr.f32.mxu0 %v2143_v25 }
  0x32   : > { %v280_v53 = vmin.f32 %v277_v37, %v275_v48  ;;  %v276_v55 = vmax.f32 %v272_v27, %v269_v51  ;;  %1977 = vmatprep.mubr.msk.f32.mxu1 %vm2145_vm8, %v2143_v25  ;;  %v1928_v51 = vld [vmem:[%s2389_s1 + $0x8] sm:$0xff] }
  0x33   : > { %v283_v50 = vmax.f32 %v279_v45, 0.0  ;;  %v282_v52 = vmax.f32 %v278_v47, 0.0 }
  0x34   : > { %v284_v57 = vmax.f32 %v280_v53, 0.0  ;;  %v281_v59 = vmin.f32 %v277_v37, %v276_v55  ;;  %v314_v55 = vld [vmem:[%s2389_s1] sm:$0xff] }
  0x35   : > { %v289_v54 = vmul.f32 %v287_v46, %v283_v50  ;;  %v288_v56 = vmul.f32 %v287_v46, %v282_v52 }
  0x36   : > { %v290_v62 = vmul.f32 %v287_v46, %v284_v57  ;;  %v285_v2 = vmax.f32 %v281_v59, 0.0 }
  0x37   : > { %v2063_v58 = vcvt.f32.s32 %v289_v54  ;;  %v2061_v60 = vand.u32 2147483647, %v289_v54  ;;  %v2055_v61 = vcvt.f32.s32 %v288_v56  ;;  %v2066_v0 = vand.u32 2147483648, %v289_v54 }
  0x38   : > { %v2053_v1 = vand.u32 2147483647, %v288_v56  ;;  %v2058_v4 = vand.u32 2147483648, %v288_v56  ;;  %v2071_v5 = vcvt.f32.s32 %v290_v62  ;;  %v2069_v8 = vand.u32 2147483647, %v290_v62 }
  0x39   : > { %v2064_v63 = vcvt.s32.f32 %v2063_v58  ;;  %v2056_v3 = vcvt.s32.f32 %v2055_v61  ;;  %v291_v9 = vmul.f32 %v287_v46, %v285_v2  ;;  %vm2220_vm4 = vcmp.lt.f32.partialorder %v2061_v60, 8388608.0  ;;  %v1933_v60 = vld [vmem:[%s2389_s1 + $0x10] sm:$0xff]  ;;  %v1936_v2 = vld [vmem:[%s2389_s1 + $0x18] sm:$0xff] }
  0x3a   : > { %v2072_v12 = vcvt.s32.f32 %v2071_v5  ;;  %v2074_v13 = vand.u32 2147483648, %v290_v62  ;;  %vm2224_vm5 = vcmp.lt.f32.partialorder %v2053_v1, 8388608.0  ;;  %vm2230_vm6 = vcmp.lt.f32.partialorder %v2069_v8, 8388608.0 }
  0x3b   : > { %v2065_v6 = vand.u32 2147483647, %v2064_v63  ;;  %v2057_v11 = vand.u32 2147483647, %v2056_v3  ;;  %v2079_v17 = vcvt.f32.s32 %v291_v9  ;;  %v2077_v20 = vand.u32 2147483647, %v291_v9 }
  0x3c   : > { %v2073_v19 = vand.u32 2147483647, %v2072_v12  ;;  %v2082_v24 = vand.u32 2147483648, %v291_v9 }
  0x3d   : > { %v2067_v14 = vor.u32 %v2066_v0, %v2065_v6  ;;  %v2059_v18 = vor.u32 %v2058_v4, %v2057_v11  ;;  %v2080_v23 = vcvt.s32.f32 %v2079_v17  ;;  %vm2078_vm7 = vcmp.lt.f32.partialorder %v2077_v20, 8388608.0 }
  0x3e   : > { %v2075_v28 = vor.u32 %v2074_v13, %v2073_v19 }
  0x3f   : > { %v2068_v21 = vsel %vm2220_vm4, %v2067_v14, %v289_v54  ;;  %v2060_v27 = vsel %vm2224_vm5, %v2059_v18, %v288_v56  ;;  %v2081_v31 = vand.u32 2147483647, %v2080_v23  ;;  %v1942_v18 = vld [vmem:[%s2389_s1 + $0x28] sm:$0xff] }
  0x40   : > { %v299_v26 = vmul.f32 %v2068_v21, %v297_v7  ;;  %v298_v30 = vmul.f32 %v2060_v27, %v297_v7  ;;  %v2076_v33 = vsel %vm2230_vm6, %v2075_v28, %v290_v62  ;;  %v1945_v27 = vld [vmem:[%s2389_s1 + $0x30] sm:$0xff]  ;;  %vm1801_vm6 = vcmask 7168  }
  0x41   : > { %v300_v35 = vmul.f32 %v2076_v33, %v297_v7  ;;  %v2083_v36 = vor.u32 %v2082_v24, %v2081_v31 }
  0x42   : > { %v306_v32 = vmax.f32 %v304_v15, %v299_v26  ;;  %v305_v34 = vmax.f32 %v304_v15, %v298_v30 }
  0x43   : > { %v307_v39 = vmax.f32 %v304_v15, %v300_v35  ;;  %v2084_v40 = vsel %vm2078_vm7, %v2083_v36, %v291_v9  ;;  %v1948_v35 = vld [vmem:[%s2389_s1 + $0x38] sm:$0xff]  ;;  %vm1810_vm7 = vcmask 15368  }
  0x44   : > { %v2241_v37 = vmin.f32 %v309_v29, %v306_v32  ;;  %v2243_v38 = vmin.f32 %v309_v29, %v305_v34  ;;  %v301_v41 = vmul.f32 %v2084_v40, %v297_v7 }
  0x45   : > { %v2247_v42 = vmin.f32 %v309_v29, %v307_v39 }
  0x46   : > { %323 = vrot.lane.b32.xlu0 %v2241_v37, %s2144_s13  ;;  %321 = vrot.lane.b32.xlu1 %v2243_v38, %s2144_s13  ;;  %v308_v43 = vmax.f32 %v304_v15, %v301_v41 }
  0x48   : > { %v313_v44 = vmin.f32 %v309_v29, %v308_v43  ;;  %v1951_v43 = vld [vmem:[%s2389_s1 + $0x40] sm:$0xff] }
  0x4a   : > { %325 = vrot.lane.b32.xlu0 %v2247_v42, %s2144_s13  ;;  %327 = vrot.lane.b32.xlu1 %v313_v44, %s2144_s13 }
  0x4e   : > { %629 = vrot.lane.b32.xlu0 %v2241_v37, %s2146_s14  ;;  %631 = vrot.lane.b32.xlu1 %v2247_v42, %s2146_s14 }
  0x52   : > { %627 = vrot.lane.b32.xlu0 %v2243_v38, %s2146_s14  ;;  %793 = vrot.lane.b32.xlu1 %v2241_v37, %s2147_s15 }
  0x56   : > { %795 = vrot.lane.b32.xlu0 %v2247_v42, %s2147_s15  ;;  %633 = vrot.lane.b32.xlu1 %v313_v44, %s2146_s14 }
  0x5a   : > { %791 = vrot.lane.b32.xlu0 %v2243_v38, %s2147_s15  ;;  %957 = vrot.lane.b32.xlu1 %v2241_v37, %s2148_s16 }
  0x5e   : > { %959 = vrot.lane.b32.xlu0 %v2247_v42, %s2148_s16  ;;  %797 = vrot.lane.b32.xlu1 %v313_v44, %s2147_s15 }
  0x62   : > { %955 = vrot.lane.b32.xlu0 %v2243_v38, %s2148_s16  ;;  %1121 = vrot.lane.b32.xlu1 %v2241_v37, %s2149_s17 }
  0x66   : > { %1123 = vrot.lane.b32.xlu0 %v2247_v42, %s2149_s17  ;;  %961 = vrot.lane.b32.xlu1 %v313_v44, %s2148_s16 }
  0x6a   : > { %1119 = vrot.lane.b32.xlu0 %v2243_v38, %s2149_s17  ;;  %1285 = vrot.lane.b32.xlu1 %v2241_v37, %s2150_s20 }
  0x6e   : > { %1287 = vrot.lane.b32.xlu0 %v2247_v42, %s2150_s20  ;;  %1125 = vrot.lane.b32.xlu1 %v313_v44, %s2149_s17 }
  0x72   : > { %1283 = vrot.lane.b32.xlu0 %v2243_v38, %s2150_s20  ;;  %1449 = vrot.lane.b32.xlu1 %v2241_v37, %s2151_s21 }
  0x76   : > { %1451 = vrot.lane.b32.xlu0 %v2247_v42, %s2151_s21  ;;  %1289 = vrot.lane.b32.xlu1 %v313_v44, %s2150_s20  ;;  %s2020_s20 = smul.u32 24, %s2404_s19 }
  0x78   : > { %s245_s23 = scalar_lea.vmem %s2392_s4, %s2020_s20 }
  0x7a   : > { %1447 = vrot.lane.b32.xlu0 %v2243_v38, %s2151_s21  ;;  %1613 = vrot.lane.b32.xlu1 %v2241_v37, %s2152_s22 }
  0x7e   : > { %1615 = vrot.lane.b32.xlu0 %v2247_v42, %s2152_s22  ;;  %1453 = vrot.lane.b32.xlu1 %v313_v44, %s2151_s21 }
  0x82   : > { %1611 = vrot.lane.b32.xlu0 %v2243_v38, %s2152_s22  ;;  %1617 = vrot.lane.b32.xlu1 %v313_v44, %s2152_s22 }
  0xb8   : > { %v324_v45 = vpop.permute.xlu0 %323  ;;  %v322_v46 = vpop.permute.xlu1 %321 }
  0xb9   : > { %v330_v50 = vsel %vm329_vm9, %v322_v46, %v324_v45 }
  0xbc   : > { %v326_v47 = vpop.permute.xlu0 %325  ;;  %v328_v49 = vpop.permute.xlu1 %327 }
  0xbd   : > { %v331_v48 = vsel %vm329_vm9, %v324_v45, %v326_v47  ;;  %v332_v52 = vsel %vm329_vm9, %v326_v47, %v328_v49 }
  0xbe   : > { %370 = vmatprep.subr.mxu0 %v331_v48  ;;  %1976 = vmatpush3.msra.mxu1 %v332_v52 }
  0xbf   : > { %371 = vmatpush1.msra.mxu0 %v330_v50  ;;  %1978 = vmatmul.mubr.msk.f32.vlgmr.msra.gmra.mxu1 %vm336_vm10, %v1928_v51 }
  0xc0   : > { %v630_v53 = vpop.permute.xlu0 %629  ;;  %514 = vmatprep.subr.mxu0 %v2241_v37  ;;  %1929 = vmatmul.mubr.msk.f32.vlgmr.msra.gmra.mxu0 %vm336_vm10, %v1928_v51  ;;  %v632_v54 = vpop.permute.xlu1 %631 }
  0xc1   : > { %515 = vmatpush1.msra.mxu0 %v2243_v38  ;;  %548 = vmatprep.mubr.f32.mxu0 %v2143_v25  ;;  %v637_v56 = vsel %vm635_vm11, %v630_v53, %v632_v54 }
  0xc2   : > { %1980 = vmatprep.subr.mxu1 %v2143_v25  ;;  %1982 = vmatprep.mubr.msk.f32.mxu1 %vm2145_vm8, %v2143_v25 }
  0xc3   : > { %675 = vmatprep.subr.mxu0 %v637_v56  ;;  %1981 = vmatpush3.msra.mxu1 %v2247_v42 }
  0xc4   : > { %v628_v57 = vpop.permute.xlu0 %627  ;;  %1931 = vmatmul.mubr.msk.f32.vlgmr.msra.gmra.mxu0 %vm336_vm10, %v314_v55  ;;  %1985 = vmatprep.subr.mxu1 %v2143_v25  ;;  %v794_v59 = vpop.permute.xlu1 %793 }
  0xc5   : > { %v636_v58 = vsel %vm635_vm11, %v628_v57, %v630_v53  ;;  %1983 = vmatmul.mubr.msk.f32.vlgmr.msra.gmra.mxu1 %vm336_vm10, %v314_v55  ;;  %709 = vmatprep.mubr.f32.mxu0 %v2143_v25 }
  0xc6   : > { %676 = vmatpush1.msra.mxu0 %v636_v58  ;;  %1987 = vmatprep.mubr.msk.f32.mxu1 %vm2145_vm8, %v2143_v25 }
  0xc8   : > { %v796_v61 = vpop.permute.xlu0 %795  ;;  %1934 = vmatmul.mubr.msk.f32.vlgmr.msra.gmra.mxu0 %vm336_vm10, %v1933_v60  ;;  %v634_v63 = vpop.permute.xlu1 %633 }
  0xc9   : > { %v801_v62 = vsel %vm799_vm12, %v794_v59, %v796_v61  ;;  %873 = vmatprep.mubr.f32.mxu0 %v2143_v25  ;;  %v638_v0 = vsel %vm635_vm11, %v632_v54, %v634_v63 }
  0xca   : > { %839 = vmatprep.subr.mxu0 %v801_v62  ;;  %1986 = vmatpush3.msra.mxu1 %v638_v0 }
  0xcb   : > { %1990 = vmatprep.subr.mxu1 %v2143_v25  ;;  %1988 = vmatmul.mubr.msk.f32.vlgmr.msra.gmra.mxu1 %vm336_vm10, %v1933_v60 }
  0xcc   : > { %v792_v1 = vpop.permute.xlu0 %791  ;;  %v958_v4 = vpop.permute.xlu1 %957  ;;  %1992 = vmatprep.mubr.msk.f32.mxu1 %vm2145_vm8, %v2143_v25 }
  0xcd   : > { %v800_v3 = vsel %vm799_vm12, %v792_v1, %v794_v59 }
  0xce   : > { %840 = vmatpush1.msra.mxu0 %v800_v3 }
  0xcf   : > { %1937 = vmatmul.mubr.msk.f32.vlgmr.msra.gmra.mxu0 %vm336_vm10, %v1936_v2 }
  0xd0   : > { %v960_v5 = vpop.permute.xlu0 %959  ;;  %1037 = vmatprep.mubr.f32.mxu0 %v2143_v25  ;;  %v798_v7 = vpop.permute.xlu1 %797 }
  0xd1   : > { %v965_v6 = vsel %vm963_vm13, %v958_v4, %v960_v5  ;;  %v802_v8 = vsel %vm799_vm12, %v796_v61, %v798_v7 }
  0xd2   : > { %1003 = vmatprep.subr.mxu0 %v965_v6  ;;  %1991 = vmatpush3.msra.mxu1 %v802_v8 }
  0xd3   : > { %1995 = vmatprep.subr.mxu1 %v2143_v25  ;;  %1993 = vmatmul.mubr.msk.f32.vlgmr.msra.gmra.mxu1 %vm336_vm10, %v1936_v2 }
  0xd4   : > { %v956_v9 = vpop.permute.xlu0 %955  ;;  %v1122_v12 = vpop.permute.xlu1 %1121  ;;  %1997 = vmatprep.mubr.msk.f32.mxu1 %vm2145_vm8, %v2143_v25 }
  0xd5   : > { %v964_v11 = vsel %vm963_vm13, %v956_v9, %v958_v4 }
  0xd6   : > { %1004 = vmatpush1.msra.mxu0 %v964_v11 }
  0xd7   : > { %1940 = vmatmul.mubr.msk.f32.vlgmr.msra.gmra.mxu0 %vm336_vm10, %v1939_v10 }
  0xd8   : > { %v1124_v13 = vpop.permute.xlu0 %1123  ;;  %1201 = vmatprep.mubr.f32.mxu0 %v2143_v25  ;;  %v962_v15 = vpop.permute.xlu1 %961 }
  0xd9   : > { %v1129_v14 = vsel %vm1127_vm14, %v1122_v12, %v1124_v13  ;;  %v966_v16 = vsel %vm963_vm13, %v960_v5, %v962_v15  ;;  %v1776_v15 = vld [vmem:[%s2390_s2] sm:$0x7] }
  0xda   : > { %1167 = vmatprep.subr.mxu0 %v1129_v14  ;;  %1996 = vmatpush3.msra.mxu1 %v966_v16  ;;  %vm1777_vm2 = vcmp.gt.f32.partialorder %v1776_v15, 0.5 }
  0xdb   : > { %2000 = vmatprep.subr.mxu1 %v2143_v25  ;;  %1998 = vmatmul.mubr.msk.f32.vlgmr.msra.gmra.mxu1 %vm336_vm10, %v1939_v10  ;;  %v1779_v10 = vlaneseq }
  0xdc   : > { %v1120_v17 = vpop.permute.xlu0 %1119  ;;  %v1286_v20 = vpop.permute.xlu1 %1285  ;;  %2002 = vmatprep.mubr.msk.f32.mxu1 %vm2145_vm8, %v2143_v25 }
  0xdd   : > { %v1128_v19 = vsel %vm1127_vm14, %v1120_v17, %v1122_v12  ;;  %v1780_v17 = vshrl.u32 %v1779_v10, 7 }
  0xde   : > { %1168 = vmatpush1.msra.mxu0 %v1128_v19 }
  0xdf   : > { %1943 = vmatmul.mubr.msk.f32.vlgmr.msra.gmra.mxu0 %vm336_vm10, %v1942_v18 }
  0xe0   : > { %v1288_v21 = vpop.permute.xlu0 %1287  ;;  %1365 = vmatprep.mubr.f32.mxu0 %v2143_v25  ;;  %v1126_v23 = vpop.permute.xlu1 %1125 }
  0xe1   : > { %v1293_v22 = vsel %vm1291_vm15, %v1286_v20, %v1288_v21  ;;  %v1130_v24 = vsel %vm1127_vm14, %v1124_v13, %v1126_v23 }
  0xe2   : > { %1331 = vmatprep.subr.mxu0 %v1293_v22  ;;  %2001 = vmatpush3.msra.mxu1 %v1130_v24  ;;  %v1781_v24 = vsub.s32 0, %v1780_v17 }
  0xe3   : > { %2003 = vmatmul.mubr.msk.f32.vlgmr.msra.gmra.mxu1 %vm336_vm10, %v1942_v18  ;;  %2005 = vmatprep.subr.mxu1 %v2143_v25 }
  0xe4   : > { %v1284_v26 = vpop.permute.xlu0 %1283  ;;  %v1450_v29 = vpop.permute.xlu1 %1449  ;;  %2007 = vmatprep.mubr.msk.f32.mxu1 %vm2145_vm8, %v2143_v25 }
  0xe5   : > { %v1292_v28 = vsel %vm1291_vm15, %v1284_v26, %v1286_v20 }
  0xe6   : > { %1332 = vmatpush1.msra.mxu0 %v1292_v28 }
  0xe7   : > { %1946 = vmatmul.mubr.msk.f32.vlgmr.msra.gmra.mxu0 %vm336_vm10, %v1945_v27 }
  0xe8   : > { %v1452_v30 = vpop.permute.xlu0 %1451  ;;  %1529 = vmatprep.mubr.f32.mxu0 %v2143_v25  ;;  %v1290_v32 = vpop.permute.xlu1 %1289 }
  0xe9   : > { %v1457_v31 = vsel %vm1455_vm0, %v1450_v29, %v1452_v30  ;;  %v1294_v33 = vsel %vm1291_vm15, %v1288_v21, %v1290_v32  ;;  %v1789_v32 = vsub.s32 2, %v1780_v17 }
  0xea   : > { %1495 = vmatprep.subr.mxu0 %v1457_v31  ;;  %2006 = vmatpush3.msra.mxu1 %v1294_v33 }
  0xeb   : > { %2008 = vmatmul.mubr.msk.f32.vlgmr.msra.gmra.mxu1 %vm336_vm10, %v1945_v27  ;;  %2010 = vmatprep.subr.mxu1 %v2143_v25  ;;  %v2153_v27 = vmov 0  }
  0xec   : > { %v1448_v34 = vpop.permute.xlu0 %1447  ;;  %v1614_v37 = vpop.permute.xlu1 %1613  ;;  %2012 = vmatprep.mubr.msk.f32.mxu1 %vm2145_vm8, %v2143_v25  ;;  %v1778_v28 = vsel %vm1777_vm2, 1, %v2153_v27 }
  0xed   : > { %v1456_v36 = vsel %vm1455_vm0, %v1448_v34, %v1450_v29  ;;  %v1785_v29 = vsub.s32 1, %v1780_v17 }
  0xee   : > { %1496 = vmatpush1.msra.mxu0 %v1456_v36  ;;  %v1782_v36 = vrot.slane %v1778_v28, %v1781_v24 }
  0xef   : > { %1949 = vmatmul.mubr.msk.f32.vlgmr.msra.gmra.mxu0 %vm336_vm10, %v1948_v35 }
  0xf0   : > { %v1616_v38 = vpop.permute.xlu0 %1615  ;;  %1693 = vmatprep.mubr.f32.mxu0 %v2143_v25  ;;  %v1454_v40 = vpop.permute.xlu1 %1453  ;;  %vm1791_vm3 = vcmp.eq.s32.totalorder %v1782_v36, 1 }
  0xf1   : > { %v1621_v39 = vsel %vm1619_vm1, %v1614_v37, %v1616_v38  ;;  %v1458_v41 = vsel %vm1455_vm0, %v1452_v30, %v1454_v40 }
  0xf2   : > { %1659 = vmatprep.subr.mxu0 %v1621_v39  ;;  %2011 = vmatpush3.msra.mxu1 %v1458_v41  ;;  %v1786_v39 = vrot.slane %v1778_v28, %v1785_v29 }
  0xf3   : > { %2013 = vmatmul.mubr.msk.f32.vlgmr.msra.gmra.mxu1 %vm336_vm10, %v1948_v35  ;;  %2015 = vmatprep.subr.mxu1 %v2143_v25 }
  0xf4   : > { %v1612_v42 = vpop.permute.xlu0 %1611  ;;  %v1618_v45 = vpop.permute.xlu1 %1617  ;;  %2017 = vmatprep.mubr.msk.f32.mxu1 %vm2145_vm8, %v2143_v25  ;;  %vm1792_vm4 = vcmp.eq.s32.totalorder %v1786_v39, 1 }
  0xf5   : > { %v1620_v44 = vsel %vm1619_vm1, %v1612_v42, %v1614_v37  ;;  %v1622_v46 = vsel %vm1619_vm1, %v1616_v38, %v1618_v45  ;;  %v1790_v45 = vrot.slane %v1778_v28, %v1789_v32 }
  0xf6   : > { %1660 = vmatpush1.msra.mxu0 %v1620_v44  ;;  %2016 = vmatpush3.msra.mxu1 %v1622_v46 }
  0xf7   : > { %1952 = vmatmul.mubr.msk.f32.vlgmr.msra.gmra.mxu0 %vm336_vm10, %v1951_v43  ;;  %2018 = vmatmul.mubr.msk.f32.vlgmr.msra.gmra.mxu1 %vm336_vm10, %v1951_v43  ;;  %vm1793_vm5 = vcmp.eq.s32.totalorder %v1790_v45, 1 }
 0x17f   : > { %v477_v48 = vpop.f32.mrf.mxu1 }
 0x180   : > { %v406_v47 = vpop.f32.mrf.mxu0 }
 0x181   : > { %v1979_v50 = vpop.f32.mrf.mxu1 }
 0x182   : > { %v408_v49 = vpop.f32.mrf.mxu0 }
 0x184   : > { %v550_v51 = vpop.f32.mrf.mxu0 }
 0x185   : > { %v621_v52 = vpop.f32.mrf.mxu1  ;;  %v551_v2 = vadd.f32 %v550_v51, %v406_v47 }
 0x186   : > { %v552_v54 = vpop.f32.mrf.mxu0  ;;  %v622_v3 = vadd.f32 %v621_v52, %v477_v48 }
 0x187   : > { %v1984_v53 = vpop.f32.mrf.mxu1  ;;  %v553_v6 = vadd.f32 %v552_v54, %v408_v49 }
 0x188   : > { %v711_v55 = vpop.f32.mrf.mxu0 }
 0x189   : > { %v786_v7 = vadd.f32 %v711_v55, %v551_v2 }
 0x18a   : > { %v713_v58 = vpop.f32.mrf.mxu0 }
 0x18b   : > { %v782_v56 = vpop.f32.mrf.mxu1  ;;  %v787_v12 = vadd.f32 %v713_v58, %v553_v6 }
 0x18c   : > { %v788_v9 = vadd.f32 %v782_v56, %v622_v3 }
 0x18d   : > { %v1989_v57 = vpop.f32.mrf.mxu1 }
 0x18f   : > { %v875_v25 = vpop.f32.mrf.mxu0 }
 0x190   : > { %v950_v13 = vadd.f32 %v875_v25, %v786_v7 }
 0x191   : > { %v877_v61 = vpop.f32.mrf.mxu0 }
 0x192   : > { %v951_v19 = vadd.f32 %v877_v61, %v787_v12 }
 0x193   : > { %v946_v59 = vpop.f32.mrf.mxu1 }
 0x194   : > { %v952_v16 = vadd.f32 %v946_v59, %v788_v9 }
 0x195   : > { %v1994_v60 = vpop.f32.mrf.mxu1 }
 0x197   : > { %v1039_v62 = vpop.f32.mrf.mxu0 }
 0x198   : > { %v1114_v20 = vadd.f32 %v1039_v62, %v950_v13 }
 0x199   : > { %v1041_v1 = vpop.f32.mrf.mxu0 }
 0x19a   : > { %v1115_v30 = vadd.f32 %v1041_v1, %v951_v19 }
 0x19b   : > { %v1110_v63 = vpop.f32.mrf.mxu1 }
 0x19c   : > { %v1116_v23 = vadd.f32 %v1110_v63, %v952_v16 }
 0x19d   : > { %v1999_v0 = vpop.f32.mrf.mxu1 }
 0x19f   : > { %v1203_v4 = vpop.f32.mrf.mxu0 }
 0x1a0   : > { %v1278_v31 = vadd.f32 %v1203_v4, %v1114_v20 }
 0x1a1   : > { %v1205_v11 = vpop.f32.mrf.mxu0 }
 0x1a2   : > { %v1279_v33 = vadd.f32 %v1205_v11, %v1115_v30 }
 0x1a3   : > { %v1274_v5 = vpop.f32.mrf.mxu1 }
 0x1a4   : > { %v1280_v34 = vadd.f32 %v1274_v5, %v1116_v23 }
 0x1a5   : > { %v2004_v8 = vpop.f32.mrf.mxu1 }
 0x1a7   : > { %v1367_v14 = vpop.f32.mrf.mxu0 }
 0x1a8   : > { %v1442_v35 = vadd.f32 %v1367_v14, %v1278_v31 }
 0x1a9   : > { %v1369_v21 = vpop.f32.mrf.mxu0 }
 0x1aa   : > { %v1443_v40 = vadd.f32 %v1369_v21, %v1279_v33 }
 0x1ab   : > { %v1438_v18 = vpop.f32.mrf.mxu1 }
 0x1ac   : > { %v1444_v41 = vadd.f32 %v1438_v18, %v1280_v34 }
 0x1ad   : > { %v2009_v22 = vpop.f32.mrf.mxu1 }
 0x1af   : > { %v1531_v26 = vpop.f32.mrf.mxu0 }
 0x1b0   : > { %v1606_v42 = vadd.f32 %v1531_v26, %v1442_v35 }
 0x1b1   : > { %v1533_v37 = vpop.f32.mrf.mxu0 }
 0x1b2   : > { %v1607_v46 = vadd.f32 %v1533_v37, %v1443_v40 }
 0x1b3   : > { %v1602_v38 = vpop.f32.mrf.mxu1 }
 0x1b4   : > { %v1608_v47 = vadd.f32 %v1602_v38, %v1444_v41 }
 0x1b5   : > { %v2014_v43 = vpop.f32.mrf.mxu1 }
 0x1b7   : > { %v1695_v44 = vpop.f32.mrf.mxu0  ;;  %v1766_v49 = vpop.f32.mrf.mxu1 }
 0x1b8   : > { %v1770_v48 = vadd.f32 %v1695_v44, %v1606_v42  ;;  %v1772_v51 = vadd.f32 %v1766_v49, %v1608_v47 }
 0x1b9   : > { %v1697_v50 = vpop.f32.mrf.mxu0  ;;  %v2019_v53 = vpop.f32.mrf.mxu1 }
 0x1ba   : > { %1773 = vst [vmem:[%s245_s23] sm:$0xff] %v1770_v48  ;;  %v1771_v52 = vadd.f32 %v1697_v50, %v1607_v46  ;;  %v1803_v54 = vsel %vm1791_vm3, %v1770_v48, 3.4028235e+38  ;;  %1775 = vst [vmem:[%s245_s23 + $0x10] sm:$0xff] %v1772_v51  ;;  %v1794_v56 = vsel %vm1791_vm3, %v1770_v48, -3.4028235e+38 }
 0x1bb   : > { %v1805_v59 = vsel %vm1793_vm5, %v1772_v51, 3.4028235e+38  ;;  %v1796_v60 = vsel %vm1793_vm5, %v1772_v51, -3.4028235e+38 }
 0x1bc   : > { %1774 = vst [vmem:[%s245_s23 + $0x8] sm:$0xff] %v1771_v52  ;;  %v1804_v55 = vsel %vm1792_vm4, %v1771_v52, 3.4028235e+38  ;;  %v1795_v57 = vsel %vm1792_vm4, %v1771_v52, -3.4028235e+38 }
 0x1bd   : > { %v1806_v58 = vmin.f32 %v1803_v54, %v1804_v55  ;;  %v1797_v25 = vmax.f32 %v1794_v56, %v1795_v57 }
 0x1bf   : > { %v1807_v61 = vmin.f32 %v1806_v58, %v1805_v59  ;;  %v1798_v62 = vmax.f32 %v1797_v25, %v1796_v60 }
 0x1c1   : > { %1808 = vmin.xlane.f32.xlu1 %v1807_v61  ;;  %1799 = vmax.xlane.f32.xlu0 %v1798_v62 }
 0x24a   : > { %v1809_v63 = vpop.xlane.xlu1 %1808  ;;  %v1800_v0 = vpop.xlane.xlu0 %1799 }
 0x24b   : > { %1802 = vst.msk [vmem:[%s249_s27] sm:$0xff] %vm1801_vm6, %v1800_v0 }
 0x24c   : > { %1811 = vst.msk [vmem:[%s249_s27] sm:$0xff] %vm1810_vm7, %v1809_v63 }
 0x24d PF: > { %s17_s18 = sadd.s32 1, %s2140_s18  }
 0x24e   : > { %p14_p1 = scmp.ge.s32.totalorder %s17_s18, 4  }
 0x250   :  { %16 = sbr.rel (!%p14_p1) target bundleno = 1 (0x1), region = 91 }
 0x255   :  { %1847 = vsyncpa [#allocation3], 1 }
 0x256   :  { %1849 = vsyncpa [#allocation3 + $0x1], 1 }

</bundles_post_ra>
